<compile_context>
chip_gen: v6e
topology: v6e:2x2x1
jax: 0.10.0
libtpu: 0.0.40
codegen_flags: <defaults>
</compile_context>

<pallas_src>
import numpy as np
import jax
import jax.numpy as jnp
from jax.experimental import pallas as pl
from jax.experimental.pallas import tpu as pltpu


LANE = 128
_TAPS = tuple((dh, dw) for dh in range(3) for dw in range(3))


# ----------------------------- Pallas kernel ------------------------------- #
def _extractor_kernel(x_ref, wc_ref, bc_ref, wf_ref, bf_ref, out_ref,
                      patch_ref, acc_ref):
    """Per grid step (b, j):
         x_ref:     (TR+2, W+2, Cin)  halo'd rows of the zero-padded image
         wc_ref:    (Kp, Cf_p)        conv weight (zero-padded K / Cfeat)
         bc_ref:    (1, Cf_p)         conv bias
         wf_ref:    (Cf_p, Ed_p)      fc weight, pre-scaled by 1/(H*W)
         bf_ref:    (1, Ed_p)         fc bias
         out_ref:   (1, Ed_p)         embedding for sample b (lane-dense)
         patch_ref: (TR, W, Kp)       VMEM scratch: on-chip im2col operand
         acc_ref:   (1, Cf_p)         VMEM scratch: running spatial sum
    """
    j = pl.program_id(1)

    trp2, wp2, cin = x_ref.shape
    tr, w = trp2 - 2, wp2 - 2
    kp = patch_ref.shape[-1]
    k = 9 * cin

    @pl.when(j == 0)
    def _init():
        acc_ref[...] = jnp.zeros_like(acc_ref)

    # ---- fused im2col: scatter the 9 shifted views into the K axis -------- #
    for t, (dh, dw) in enumerate(_TAPS):
        patch_ref[:, :, t * cin:(t + 1) * cin] = x_ref[dh:dh + tr, dw:dw + w, :]
    if kp > k:                                        # zero the K padding
        patch_ref[:, :, k:] = jnp.zeros((tr, w, kp - k), patch_ref.dtype)

    patches = patch_ref[...].reshape(tr * w, kp)      # free relabel (W % 8 == 0)

    # ---- conv as one MXU matmul + bias + ReLU ------------------------------ #
    feat = jnp.dot(patches, wc_ref[...], preferred_element_type=jnp.float32)
    feat = jnp.maximum(feat + bc_ref[...], 0.0)       # (TR*W, Cf_p)

    # ---- global average pool: accumulate spatial sum ----------------------- #
    acc_ref[...] += jnp.sum(feat, axis=0, keepdims=True)

    # ---- fc on the last row-tile (1/(H*W) folded into wf) ------------------ #
    @pl.when(j == pl.num_programs(1) - 1)
    def _finalize():
        emb = jnp.dot(acc_ref[...], wf_ref[...],
                      preferred_element_type=jnp.float32) + bf_ref[...]
        out_ref[...] = emb.astype(out_ref.dtype)


# ------------------------------- Wrapper ----------------------------------- #
def _round_up(x, m):
    return (x + m - 1) // m * m


def embedding_extractor(x_nchw, conv_w, conv_b, fc_w, fc_b, *, row_tile=8):
    """x_nchw: (N, Cin, H, W) f32;  conv_w: (3,3,Cin,Cfeat);  conv_b: (Cfeat,)
       fc_w: (Cfeat, Edim);  fc_b: (Edim,)  ->  (N, Edim) f32 embeddings."""
    x = jnp.transpose(x_nchw, (0, 2, 3, 1))           # NHWC
    N, H, W, Cin = x.shape
    Cfeat = conv_w.shape[-1]
    Edim = fc_w.shape[-1]
    assert H % row_tile == 0, "row_tile must divide H"
    assert W % 8 == 0, "W must be a multiple of 8 (sublane tile)"
    num_t = H // row_tile

    K = 9 * Cin
    Kp = _round_up(K, LANE)
    Cf_p = _round_up(Cfeat, LANE)
    Ed_p = _round_up(Edim, LANE)

    # Zero-padded image cut into halo-overlapping row tiles:
    #   tiles[n, j] = padded rows [j*row_tile, j*row_tile + row_tile + 2)
    xp = jnp.pad(x, ((0, 0), (1, 1), (1, 1), (0, 0)))          # (N, H+2, W+2, Cin)
    tiles = jnp.stack(
        [xp[:, j * row_tile: j * row_tile + row_tile + 2] for j in range(num_t)],
        axis=1)                                                # (N, num_t, TR+2, W+2, Cin)

    # Zero-padded, lane-dense parameters (padding contributes exactly zero).
    wc = jnp.zeros((Kp, Cf_p), jnp.float32).at[:K, :Cfeat].set(
        conv_w.reshape(K, Cfeat).astype(jnp.float32))
    bc = jnp.zeros((1, Cf_p), jnp.float32).at[0, :Cfeat].set(conv_b)
    wf = jnp.zeros((Cf_p, Ed_p), jnp.float32).at[:Cfeat, :Edim].set(
        fc_w.astype(jnp.float32) / float(H * W))               # fold pool's 1/HW
    bf = jnp.zeros((1, Ed_p), jnp.float32).at[0, :Edim].set(fc_b)

    trp2, wp2 = row_tile + 2, W + 2

    out_p = pl.pallas_call(
        _extractor_kernel,
        out_shape=jax.ShapeDtypeStruct((N, 1, Ed_p), jnp.float32),
        grid_spec=pltpu.PrefetchScalarGridSpec(
            num_scalar_prefetch=0,
            grid=(N, num_t),
            in_specs=[
                pl.BlockSpec((None, None, trp2, wp2, Cin),
                             lambda b, j: (b, j, 0, 0, 0)),
                pl.BlockSpec((Kp, Cf_p), lambda b, j: (0, 0)),
                pl.BlockSpec((1, Cf_p), lambda b, j: (0, 0)),
                pl.BlockSpec((Cf_p, Ed_p), lambda b, j: (0, 0)),
                pl.BlockSpec((1, Ed_p), lambda b, j: (0, 0)),
            ],
            out_specs=pl.BlockSpec((None, 1, Ed_p), lambda b, j: (b, 0, 0)),
            scratch_shapes=[
                pltpu.VMEM((row_tile, W, Kp), jnp.float32),    # on-chip im2col
                pltpu.VMEM((1, Cf_p), jnp.float32),            # pooled-sum acc
            ],
        ),
        compiler_params=pltpu.CompilerParams(
            dimension_semantics=("parallel", "arbitrary")),
    )(tiles, wc, bc, wf, bf)

    return out_p[:, 0, :Edim]


# ------------------------------ Reference ---------------------------------- #
def _reference(x_nchw, conv_w, conv_b, fc_w, fc_b):
    x = jnp.transpose(x_nchw, (0, 2, 3, 1))
    N, H, W, Cin = x.shape
    xp = jnp.pad(x, ((0, 0), (1, 1), (1, 1), (0, 0)))
    cols = [xp[:, dh:dh + H, dw:dw + W, :] for dh in range(3) for dw in range(3)]
    patches = jnp.concatenate(cols, axis=-1).reshape(N, H * W, 9 * Cin)
    feat = patches @ conv_w.reshape(9 * Cin, -1) + conv_b[None, None, :]
    feat = jnp.maximum(feat, 0.0)
    pooled = jnp.mean(feat, axis=1)
    return pooled @ fc_w + fc_b[None, :]


# --------------------------------- Main ------------------------------------ #
if __name__ == "__main__":
    N, Cin, H, W = 2, 4, 16, 16     # input image tensor (NCHW)
    Cfeat, Edim = 32, 64            # backbone channels, embedding dim

    key = jax.random.PRNGKey(0)
    k_x, k_cw, k_cb, k_fw, k_fb = jax.random.split(key, 5)

    x = jax.random.normal(k_x, (N, Cin, H, W), dtype=jnp.float32)
    conv_w = jax.random.normal(k_cw, (3, 3, Cin, Cfeat), dtype=jnp.float32) * 0.1
    conv_b = jax.random.normal(k_cb, (Cfeat,), dtype=jnp.float32) * 0.1
    fc_w = jax.random.normal(k_fw, (Cfeat, Edim), dtype=jnp.float32) * 0.1
    fc_b = jax.random.normal(k_fb, (Edim,), dtype=jnp.float32) * 0.1

    out = jax.block_until_ready(
        jax.jit(embedding_extractor)(x, conv_w, conv_b, fc_w, fc_b))
    ref = jax.block_until_ready(_reference(x, conv_w, conv_b, fc_w, fc_b))

    assert out.shape == (N, Edim) and out.dtype == jnp.float32
    np.testing.assert_allclose(np.asarray(out), np.asarray(ref),
                               rtol=1e-4, atol=1e-4)
    print("KERNEL_OK")
</pallas_src>

<mosaic_0001>
module attributes {stable_mosaic.version = 11 : i64} {
  func.func @_extractor_kernel(%arg0: i32, %arg1: i32, %arg2: memref<1x1x10x18x4xf32, #tpu.memory_space<vmem>>, %arg3: memref<128x128xf32, #tpu.memory_space<vmem>>, %arg4: memref<1x128xf32, #tpu.memory_space<vmem>>, %arg5: memref<128x128xf32, #tpu.memory_space<vmem>>, %arg6: memref<1x128xf32, #tpu.memory_space<vmem>>, %arg7: memref<1x1x128xf32, #tpu.memory_space<vmem>>, %arg8: memref<8x16x128xf32, #tpu.memory_space<vmem>>, %arg9: memref<1x128xf32, #tpu.memory_space<vmem>>) attributes {dimension_semantics = [#tpu.dimension_semantics<parallel>, #tpu.dimension_semantics<arbitrary>], iteration_bounds = array<i64: 2, 2>, scalar_prefetch = 0 : i64, scratch_operands = 2 : i64, tpu.core_type = #tpu.core_type<tc>, window_params = [{transform_indices = @transform_0, window_bounds = array<i64: 1, 1, 10, 18, 4>}, {pipeline_mode = #tpu.pipeline_mode<synchronous>, transform_indices = @transform_1, window_bounds = array<i64: 128, 128>}, {pipeline_mode = #tpu.pipeline_mode<synchronous>, transform_indices = @transform_2, window_bounds = array<i64: 1, 128>}, {pipeline_mode = #tpu.pipeline_mode<synchronous>, transform_indices = @transform_3, window_bounds = array<i64: 128, 128>}, {pipeline_mode = #tpu.pipeline_mode<synchronous>, transform_indices = @transform_4, window_bounds = array<i64: 1, 128>}, {transform_indices = @transform_5, window_bounds = array<i64: 1, 1, 128>}]} {
    %c0_i32 = arith.constant 0 : i32
    %0 = arith.cmpi eq, %arg1, %c0_i32 : i32
    %1 = arith.extui %0 : i1 to i32
    %c0_i32_0 = arith.constant 0 : i32
    %2 = arith.cmpi ne, %1, %c0_i32_0 : i32
    scf.if %2 {
      %cst_79 = arith.constant 0.000000e+00 : f32
      %49 = vector.broadcast %cst_79 : f32 to vector<1x128xf32>
      %c0_80 = arith.constant 0 : index
      %c0_81 = arith.constant 0 : index
      %50 = vector.load %arg9[%c0_80, %c0_81] : memref<1x128xf32, #tpu.memory_space<vmem>>, vector<1x128xf32>
      tpu.vector_store %arg9[%c0_80, %c0_81], %49 {strides = array<i32>} : memref<1x128xf32, #tpu.memory_space<vmem>>, vector<1x128xf32>,
    } else {
    }
    %c0 = arith.constant 0 : index
    %c0_1 = arith.constant 0 : index
    %c0_2 = arith.constant 0 : index
    %c0_3 = arith.constant 0 : index
    %c0_4 = arith.constant 0 : index
    %3 = vector.load %arg2[%c0, %c0_1, %c0_2, %c0_3, %c0_4] : memref<1x1x10x18x4xf32, #tpu.memory_space<vmem>>, vector<1x1x8x16x4xf32>
    %4 = vector.shape_cast %3 : vector<1x1x8x16x4xf32> to vector<8x16x4xf32>
    %c0_5 = arith.constant 0 : index
    %c0_6 = arith.constant 0 : index
    %c0_7 = arith.constant 0 : index
    %5 = vector.load %arg8[%c0_5, %c0_6, %c0_7] : memref<8x16x128xf32, #tpu.memory_space<vmem>>, vector<8x16x4xf32>
    tpu.vector_store %arg8[%c0_5, %c0_6, %c0_7], %4 {strides = array<i32>} : memref<8x16x128xf32, #tpu.memory_space<vmem>>, vector<8x16x4xf32>,
    %c0_8 = arith.constant 0 : index
    %c0_9 = arith.constant 0 : index
    %c0_10 = arith.constant 0 : index
    %c1 = arith.constant 1 : index
    %c0_11 = arith.constant 0 : index
    %6 = vector.load %arg2[%c0_8, %c0_9, %c0_10, %c1, %c0_11] : memref<1x1x10x18x4xf32, #tpu.memory_space<vmem>>, vector<1x1x8x16x4xf32>
    %7 = vector.shape_cast %6 : vector<1x1x8x16x4xf32> to vector<8x16x4xf32>
    %c0_12 = arith.constant 0 : index
    %c0_13 = arith.constant 0 : index
    %c4 = arith.constant 4 : index
    %8 = vector.load %arg8[%c0_12, %c0_13, %c4] : memref<8x16x128xf32, #tpu.memory_space<vmem>>, vector<8x16x4xf32>
    tpu.vector_store %arg8[%c0_12, %c0_13, %c4], %7 {strides = array<i32>} : memref<8x16x128xf32, #tpu.memory_space<vmem>>, vector<8x16x4xf32>,
    %c0_14 = arith.constant 0 : index
    %c0_15 = arith.constant 0 : index
    %c0_16 = arith.constant 0 : index
    %c2 = arith.constant 2 : index
    %c0_17 = arith.constant 0 : index
    %9 = vector.load %arg2[%c0_14, %c0_15, %c0_16, %c2, %c0_17] : memref<1x1x10x18x4xf32, #tpu.memory_space<vmem>>, vector<1x1x8x16x4xf32>
    %10 = vector.shape_cast %9 : vector<1x1x8x16x4xf32> to vector<8x16x4xf32>
    %c0_18 = arith.constant 0 : index
    %c0_19 = arith.constant 0 : index
    %c8 = arith.constant 8 : index
    %11 = vector.load %arg8[%c0_18, %c0_19, %c8] : memref<8x16x128xf32, #tpu.memory_space<vmem>>, vector<8x16x4xf32>
    tpu.vector_store %arg8[%c0_18, %c0_19, %c8], %10 {strides = array<i32>} : memref<8x16x128xf32, #tpu.memory_space<vmem>>, vector<8x16x4xf32>,
    %c0_20 = arith.constant 0 : index
    %c0_21 = arith.constant 0 : index
    %c1_22 = arith.constant 1 : index
    %c0_23 = arith.constant 0 : index
    %c0_24 = arith.constant 0 : index
    %12 = vector.load %arg2[%c0_20, %c0_21, %c1_22, %c0_23, %c0_24] : memref<1x1x10x18x4xf32, #tpu.memory_space<vmem>>, vector<1x1x8x16x4xf32>
    %13 = vector.shape_cast %12 : vector<1x1x8x16x4xf32> to vector<8x16x4xf32>
    %c0_25 = arith.constant 0 : index
    %c0_26 = arith.constant 0 : index
    %c12 = arith.constant 12 : index
    %14 = vector.load %arg8[%c0_25, %c0_26, %c12] : memref<8x16x128xf32, #tpu.memory_space<vmem>>, vector<8x16x4xf32>
    tpu.vector_store %arg8[%c0_25, %c0_26, %c12], %13 {strides = array<i32>} : memref<8x16x128xf32, #tpu.memory_space<vmem>>, vector<8x16x4xf32>,
    %c0_27 = arith.constant 0 : index
    %c0_28 = arith.constant 0 : index
    %c1_29 = arith.constant 1 : index
    %c1_30 = arith.constant 1 : index
    %c0_31 = arith.constant 0 : index
    %15 = vector.load %arg2[%c0_27, %c0_28, %c1_29, %c1_30, %c0_31] : memref<1x1x10x18x4xf32, #tpu.memory_space<vmem>>, vector<1x1x8x16x4xf32>
    %16 = vector.shape_cast %15 : vector<1x1x8x16x4xf32> to vector<8x16x4xf32>
    %c0_32 = arith.constant 0 : index
    %c0_33 = arith.constant 0 : index
    %c16 = arith.constant 16 : index
    %17 = vector.load %arg8[%c0_32, %c0_33, %c16] : memref<8x16x128xf32, #tpu.memory_space<vmem>>, vector<8x16x4xf32>
    tpu.vector_store %arg8[%c0_32, %c0_33, %c16], %16 {strides = array<i32>} : memref<8x16x128xf32, #tpu.memory_space<vmem>>, vector<8x16x4xf32>,
    %c0_34 = arith.constant 0 : index
    %c0_35 = arith.constant 0 : index
    %c1_36 = arith.constant 1 : index
    %c2_37 = arith.constant 2 : index
    %c0_38 = arith.constant 0 : index
    %18 = vector.load %arg2[%c0_34, %c0_35, %c1_36, %c2_37, %c0_38] : memref<1x1x10x18x4xf32, #tpu.memory_space<vmem>>, vector<1x1x8x16x4xf32>
    %19 = vector.shape_cast %18 : vector<1x1x8x16x4xf32> to vector<8x16x4xf32>
    %c0_39 = arith.constant 0 : index
    %c0_40 = arith.constant 0 : index
    %c20 = arith.constant 20 : index
    %20 = vector.load %arg8[%c0_39, %c0_40, %c20] : memref<8x16x128xf32, #tpu.memory_space<vmem>>, vector<8x16x4xf32>
    tpu.vector_store %arg8[%c0_39, %c0_40, %c20], %19 {strides = array<i32>} : memref<8x16x128xf32, #tpu.memory_space<vmem>>, vector<8x16x4xf32>,
    %c0_41 = arith.constant 0 : index
    %c0_42 = arith.constant 0 : index
    %c2_43 = arith.constant 2 : index
    %c0_44 = arith.constant 0 : index
    %c0_45 = arith.constant 0 : index
    %21 = vector.load %arg2[%c0_41, %c0_42, %c2_43, %c0_44, %c0_45] : memref<1x1x10x18x4xf32, #tpu.memory_space<vmem>>, vector<1x1x8x16x4xf32>
    %22 = vector.shape_cast %21 : vector<1x1x8x16x4xf32> to vector<8x16x4xf32>
    %c0_46 = arith.constant 0 : index
    %c0_47 = arith.constant 0 : index
    %c24 = arith.constant 24 : index
    %23 = vector.load %arg8[%c0_46, %c0_47, %c24] : memref<8x16x128xf32, #tpu.memory_space<vmem>>, vector<8x16x4xf32>
    tpu.vector_store %arg8[%c0_46, %c0_47, %c24], %22 {strides = array<i32>} : memref<8x16x128xf32, #tpu.memory_space<vmem>>, vector<8x16x4xf32>,
    %c0_48 = arith.constant 0 : index
    %c0_49 = arith.constant 0 : index
    %c2_50 = arith.constant 2 : index
    %c1_51 = arith.constant 1 : index
    %c0_52 = arith.constant 0 : index
    %24 = vector.load %arg2[%c0_48, %c0_49, %c2_50, %c1_51, %c0_52] : memref<1x1x10x18x4xf32, #tpu.memory_space<vmem>>, vector<1x1x8x16x4xf32>
    %25 = vector.shape_cast %24 : vector<1x1x8x16x4xf32> to vector<8x16x4xf32>
    %c0_53 = arith.constant 0 : index
    %c0_54 = arith.constant 0 : index
    %c28 = arith.constant 28 : index
    %26 = vector.load %arg8[%c0_53, %c0_54, %c28] : memref<8x16x128xf32, #tpu.memory_space<vmem>>, vector<8x16x4xf32>
    tpu.vector_store %arg8[%c0_53, %c0_54, %c28], %25 {strides = array<i32>} : memref<8x16x128xf32, #tpu.memory_space<vmem>>, vector<8x16x4xf32>,
    %c0_55 = arith.constant 0 : index
    %c0_56 = arith.constant 0 : index
    %c2_57 = arith.constant 2 : index
    %c2_58 = arith.constant 2 : index
    %c0_59 = arith.constant 0 : index
    %27 = vector.load %arg2[%c0_55, %c0_56, %c2_57, %c2_58, %c0_59] : memref<1x1x10x18x4xf32, #tpu.memory_space<vmem>>, vector<1x1x8x16x4xf32>
    %28 = vector.shape_cast %27 : vector<1x1x8x16x4xf32> to vector<8x16x4xf32>
    %c0_60 = arith.constant 0 : index
    %c0_61 = arith.constant 0 : index
    %c32 = arith.constant 32 : index
    %29 = vector.load %arg8[%c0_60, %c0_61, %c32] : memref<8x16x128xf32, #tpu.memory_space<vmem>>, vector<8x16x4xf32>
    tpu.vector_store %arg8[%c0_60, %c0_61, %c32], %28 {strides = array<i32>} : memref<8x16x128xf32, #tpu.memory_space<vmem>>, vector<8x16x4xf32>,
    %cst = arith.constant 0.000000e+00 : f32
    %30 = vector.broadcast %cst : f32 to vector<8x16x92xf32>
    %c0_62 = arith.constant 0 : index
    %c0_63 = arith.constant 0 : index
    %c36 = arith.constant 36 : index
    %31 = vector.load %arg8[%c0_62, %c0_63, %c36] : memref<8x16x128xf32, #tpu.memory_space<vmem>>, vector<8x16x92xf32>
    tpu.vector_store %arg8[%c0_62, %c0_63, %c36], %30 {strides = array<i32>} : memref<8x16x128xf32, #tpu.memory_space<vmem>>, vector<8x16x92xf32>,
    %c0_64 = arith.constant 0 : index
    %c0_65 = arith.constant 0 : index
    %c0_66 = arith.constant 0 : index
    %32 = vector.load %arg8[%c0_64, %c0_65, %c0_66] : memref<8x16x128xf32, #tpu.memory_space<vmem>>, vector<8x16x128xf32>
    %33 = vector.shape_cast %32 : vector<8x16x128xf32> to vector<128x128xf32>
    %c0_67 = arith.constant 0 : index
    %c0_68 = arith.constant 0 : index
    %34 = vector.load %arg3[%c0_67, %c0_68] : memref<128x128xf32, #tpu.memory_space<vmem>>, vector<128x128xf32>
    %cst_69 = arith.constant dense<0.000000e+00> : vector<128x128xf32>
    %35 = tpu.matmul %33, %34, %cst_69 {dimension_numbers = #tpu.dot_dimension_numbers<[1], [0], [0], [1], [0, 0, 1, 1], [], []>} : vector<128x128xf32>, vector<128x128xf32>, vector<128x128xf32> -> vector<128x128xf32>
    %c0_70 = arith.constant 0 : index
    %c0_71 = arith.constant 0 : index
    %36 = vector.load %arg4[%c0_70, %c0_71] : memref<1x128xf32, #tpu.memory_space<vmem>>, vector<1x128xf32>
    %37 = vector.broadcast %36 : vector<1x128xf32> to vector<128x128xf32>
    %38 = arith.addf %35, %37 : vector<128x128xf32>
    %cst_72 = arith.constant 0.000000e+00 : f32
    %39 = vector.broadcast %cst_72 : f32 to vector<128x128xf32>
    %40 = arith.maximumf %38, %39 : vector<128x128xf32>
    %c0_73 = arith.constant 0 : index
    %c0_74 = arith.constant 0 : index
    %41 = vector.load %arg9[%c0_73, %c0_74] : memref<1x128xf32, #tpu.memory_space<vmem>>, vector<1x128xf32>
    %cst_75 = arith.constant dense<0.000000e+00> : vector<128xf32>
    %42 = vector.multi_reduction <add>, %40, %cst_75 [0] : vector<128x128xf32> to vector<128xf32>
    %43 = vector.shape_cast %42 : vector<128xf32> to vector<1x128xf32>
    %44 = arith.addf %41, %43 : vector<1x128xf32>
    %c0_76 = arith.constant 0 : index
    %c0_77 = arith.constant 0 : index
    %45 = vector.load %arg9[%c0_76, %c0_77] : memref<1x128xf32, #tpu.memory_space<vmem>>, vector<1x128xf32>
    tpu.vector_store %arg9[%c0_76, %c0_77], %44 {strides = array<i32>} : memref<1x128xf32, #tpu.memory_space<vmem>>, vector<1x128xf32>,
    %c1_i32 = arith.constant 1 : i32
    %46 = arith.cmpi eq, %arg1, %c1_i32 : i32
    %47 = arith.extui %46 : i1 to i32
    %c0_i32_78 = arith.constant 0 : i32
    %48 = arith.cmpi ne, %47, %c0_i32_78 : i32
    scf.if %48 {
      %c0_79 = arith.constant 0 : index
      %c0_80 = arith.constant 0 : index
      %49 = vector.load %arg9[%c0_79, %c0_80] : memref<1x128xf32, #tpu.memory_space<vmem>>, vector<1x128xf32>
      %c0_81 = arith.constant 0 : index
      %c0_82 = arith.constant 0 : index
      %50 = vector.load %arg5[%c0_81, %c0_82] : memref<128x128xf32, #tpu.memory_space<vmem>>, vector<128x128xf32>
      %cst_83 = arith.constant dense<0.000000e+00> : vector<1x128xf32>
      %51 = tpu.matmul %49, %50, %cst_83 {dimension_numbers = #tpu.dot_dimension_numbers<[1], [0], [0], [1], [0, 0, 1, 1], [], []>} : vector<1x128xf32>, vector<128x128xf32>, vector<1x128xf32> -> vector<1x128xf32>
      %c0_84 = arith.constant 0 : index
      %c0_85 = arith.constant 0 : index
      %52 = vector.load %arg6[%c0_84, %c0_85] : memref<1x128xf32, #tpu.memory_space<vmem>>, vector<1x128xf32>
      %53 = arith.addf %51, %52 : vector<1x128xf32>
      %c0_86 = arith.constant 0 : index
      %c0_87 = arith.constant 0 : index
      %c0_88 = arith.constant 0 : index
      %54 = vector.load %arg7[%c0_86, %c0_87, %c0_88] : memref<1x1x128xf32, #tpu.memory_space<vmem>>, vector<1x1x128xf32>
      %55 = vector.shape_cast %54 : vector<1x1x128xf32> to vector<1x128xf32>
      %56 = vector.shape_cast %53 : vector<1x128xf32> to vector<1x1x128xf32>
      tpu.vector_store %arg7[%c0_86, %c0_87, %c0_88], %56 {strides = array<i32>} : memref<1x1x128xf32, #tpu.memory_space<vmem>>, vector<1x1x128xf32>,
    } else {
    }
    return
  }
  func.func @transform_0(%arg0: i32, %arg1: i32) -> (i32, i32, i32, i32, i32) {
    %c0_i32 = arith.constant 0 : i32
    %c0_i32_0 = arith.constant 0 : i32
    %c0_i32_1 = arith.constant 0 : i32
    %c0_i32_2 = arith.constant 0 : i32
    return %arg0, %arg1, %c0_i32, %c0_i32_0, %c0_i32_1 : i32, i32, i32, i32, i32
  }
  func.func @transform_1(%arg0: i32, %arg1: i32) -> (i32, i32) {
    %c0_i32 = arith.constant 0 : i32
    %c0_i32_0 = arith.constant 0 : i32
    %c0_i32_1 = arith.constant 0 : i32
    return %c0_i32, %c0_i32_0 : i32, i32
  }
  func.func @transform_2(%arg0: i32, %arg1: i32) -> (i32, i32) {
    %c0_i32 = arith.constant 0 : i32
    %c0_i32_0 = arith.constant 0 : i32
    %c0_i32_1 = arith.constant 0 : i32
    return %c0_i32, %c0_i32_0 : i32, i32
  }
  func.func @transform_3(%arg0: i32, %arg1: i32) -> (i32, i32) {
    %c0_i32 = arith.constant 0 : i32
    %c0_i32_0 = arith.constant 0 : i32
    %c0_i32_1 = arith.constant 0 : i32
    return %c0_i32, %c0_i32_0 : i32, i32
  }
  func.func @transform_4(%arg0: i32, %arg1: i32) -> (i32, i32) {
    %c0_i32 = arith.constant 0 : i32
    %c0_i32_0 = arith.constant 0 : i32
    %c0_i32_1 = arith.constant 0 : i32
    return %c0_i32, %c0_i32_0 : i32, i32
  }
  func.func @transform_5(%arg0: i32, %arg1: i32) -> (i32, i32, i32) {
    %c0_i32 = arith.constant 0 : i32
    %c0_i32_0 = arith.constant 0 : i32
    %c0_i32_1 = arith.constant 0 : i32
    return %arg0, %c0_i32, %c0_i32_0 : i32, i32, i32
  }
}

</mosaic_0001>

<bundles_post_ra>
// kernel: embedding_extractor.1
= control target key start
LH: loop header
LB: loop body
LE: loop exit
PB: predicated region body
PF: predicated region fallthrough
CT: control target
= control target key end

     0   :  { %10 = vsyncpa [#allocation5], 0  ;;  %s2632_s0 = inlined_call_operand.vmem [shape: f32[2,2,10,18,4], index: 0, kind: input, shape index: {}]   ;;  %s2633_s1 = inlined_call_operand.vmem [shape: f32[128,128], index: 1, kind: input, shape index: {}]   ;;  %s2634_s2 = inlined_call_operand.vmem [shape: f32[1,128], index: 2, kind: input, shape index: {}]   ;;  %s2635_s3 = inlined_call_operand.vmem [shape: f32[128,128], index: 3, kind: input, shape index: {}]   ;;  %s2636_s4 = inlined_call_operand.vmem [shape: f32[1,128], index: 4, kind: input, shape index: {}]   ;;  %s2637_s5 = inlined_call_operand.hbm [shape: f32[2,1,128], index: 5, kind: output, shape index: {}]  }
   0x1   :  { %12 = vsyncpa [#allocation5 + $0x1], 0  ;;  %s1988_s18 = smov 0   ;;  %s1990_s19 = smov 0  }
   0x2   :  { %s1992_s20 = smov 0   ;;  %s1994_s21 = smov 0  }
   0x3   :  { %s1996_s22 = smov 0   ;;  %s1998_s23 = smov 0  }
   0x4   :  { %s2000_s24 = smov 0   ;;  %s2002_s25 = smov 0  }
   0x5 LB: > { %s1486_s26 = sadd.s32 4294967295, %s1943_s25   ;;  %s1487_s27 = sadd.s32 4294967294, %s1943_s25   ;;  %s1943_s25 = sphi %s2002_s25, %s18_s25   ;;  %s1939_s24 = sphi %s2000_s24, %s2660_s24   ;;  %s1935_s23 = sphi %s1998_s23, %s2659_s23   ;;  %s1931_s22 = sphi %s1996_s22, %s2658_s22   ;;  %s1927_s21 = sphi %s1994_s21, %s2657_s21   ;;  %s1923_s20 = sphi %s1992_s20, %s2656_s20   ;;  %s1919_s19 = sphi %s1990_s19, %s2655_s19   ;;  %s1915_s18 = sphi %s1988_s18, %s2654_s18  }
   0x6   : > { %s27_s28 = sadd.s32 1, %s1935_s23  ;;  %s30_s29 = sadd.s32 1, %s1939_s24 }
   0x7   : > { %p28_p0 = scmp.ge.s32.totalorder %s27_s28, 2  ;;  %p159_p1 = scmp.ne.s32.totalorder %s1923_s20, %s1919_s19 }
   0x8   : > { %p160_p2 = scmp.eq.s32.totalorder %s1486_s26, 3  ;;  %p165_p4 = scmp.ne.s32.totalorder %s1919_s19, %s1915_s18 }
   0x9   : > { %s2662_s28 = smov (%p28_p0, %s27_s28), 0  ;;  %s2664_s29 = smov (!%p28_p0, %s30_s29), %s1939_s24 }
   0xa   : > { %p2037_p3 = por %p160_p2, %p159_p1  ;;  %p32_p5 = scmp.ge.s32.totalorder %s2664_s29, 2 }
   0xb   : > { %p166_p6 = scmp.eq.s32.totalorder %s1487_s27, 3  ;;  %p1490_p7 = scmp.ge.s32.totalorder %s1943_s25, 1 }
   0xc   : > { %p208_p8 = scmp.lt.s32.totalorder %s1943_s25, 5  ;;  %s2666_s29 = smov (%p32_p5, %s2664_s29), 0 }
   0xd   : > { %p2047_p9 = por %p166_p6, %p165_p4  ;;  %s146_s7 = ssub.s32 %s1939_s24, %s2666_s29 }
   0xe   : > { %p209_p10 = pnand %p1490_p7, %p208_p8  ;;  %s149_s8 = sadd.s32 1, %s1923_s20 }
   0xf   : > { %p147_p11 = scmp.eq.s32.totalorder %s146_s7, 0  ;;  %s2638_s10 = sand.u32 (!%p209_p10), 1, %s1919_s19  }
  0x10   : > { %212 = sbr.rel (%p209_p10) target bundleno = 882 (0x372), region = 40  ;;  %p239_p12 = scmp.lt.s32.totalorder (!%p209_p10), %s1931_s22, 1 }
  0x11   : > { %s2055_s9 = scalar_select %p147_p11, %s1923_s20, %s149_s8  }
  0x12   : > { %p241_p13 = scmp.lt.s32.totalorder (!%p209_p10), %s1927_s21, 1  ;;  %s2069_s7 = scalar_lea.vmem (!%p209_p10), [#allocation4], %s2638_s10 }
  0x13   : > { %p1492_p0 = scmp.ne.s32.totalorder (!%p209_p10), %s1927_s21, 0 }
  0x15   : > { %s240_s11 = scalar_select %p239_p12, %s1931_s22, 1 }
  0x16   : > { %s242_s12 = scalar_select %p241_p13, %s1927_s21, 1 }
  0x17   : > { %s1767_s13 = smul.u32 60, %s240_s11 }
  0x18   : > { %s1766_s14 = smul.u32 30, %s242_s12 }
  0x19   : > { %251 = sbr.rel (%p1492_p0) target bundleno = 32 (0x20), region = 44 }
  0x1a   : > { %s245_s15 = sadd.s32 %s1767_s13, %s1766_s14 }
  0x1b   : > { %s1491_s16 = sshll.u32 %s245_s15, 3 }
  0x1c   : > { %s2065_s27 = scalar_lea.vmem %s2632_s0, %s1491_s16 }
  0x1e   : > { %v1945_v0 = vmov 0.0  }
  0x1f   : > { %252 = vst [vmem:[#allocation3] sm:$0x1] %v1945_v0 }
  0x20 PF: > { %v286_v1 = vld [vmem:[%s2065_s27 + $0x1] sm:$0xff]  ;;  %s2639_s8 = smov 4   ;;  %s1947_s11 = smov 8   ;;  %v1493_v3 = vld [vmem:[%s2065_s27 + $0x18] sm:$0xff]  ;;  %vm269_vm0 = vcmask 31744   ;;  %v287_v4 = vld [vmem:[%s2065_s27 + $0x9] sm:$0xff] }
  0x21   : > { %v383_v2 = vld [vmem:[%s2065_s27 + $0x2] sm:$0xff]  ;;  %318 = vrot.lane.b32.xlu0 %v286_v1, %s2639_s8  ;;  %v384_v5 = vld [vmem:[%s2065_s27 + $0xa] sm:$0xff]  ;;  %272 = vst.msk [vmem:[#allocation2 + $0x10] sm:$0xff] %vm269_vm0, %v1493_v3  ;;  %v1542_v8 = vld [vmem:[%s2065_s27 + $0x38] sm:$0xff]  ;;  %s2643_s12 = smov 12   ;;  %s1949_s13 = smov 16  }
  0x22   : > { %415 = vrot.lane.b32.xlu1 %v383_v2, %s1947_s11  ;;  %v1494_v6 = vld [vmem:[%s2065_s27 + $0x20] sm:$0xff]  ;;  %v1541_v7 = vld [vmem:[%s2065_s27 + $0x30] sm:$0xff]  ;;  %275 = vst.msk [vmem:[#allocation2 + $0x28] sm:$0xff] %vm269_vm0, %v1542_v8  ;;  %v1543_v9 = vld [vmem:[%s2065_s27 + $0x48] sm:$0xff]  ;;  %s1950_s14 = smov 20   ;;  %s1951_s15 = smov 24  }
  0x23   : > { %273 = vst.msk [vmem:[#allocation2 + $0x18] sm:$0xff] %vm269_vm0, %v1494_v6  ;;  %274 = vst.msk [vmem:[#allocation2 + $0x20] sm:$0xff] %vm269_vm0, %v1541_v7  ;;  %v2090_v10 = vld [vmem:[%s2065_s27 + $0x50] sm:$0xff]  ;;  %v2096_v11 = vld [vmem:[%s2065_s27 + $0x60] sm:$0xff]  ;;  %s2645_s16 = smov 28   ;;  %s2641_s17 = smov 32  }
  0x24   : > { %276 = vst.msk [vmem:[#allocation2 + $0x30] sm:$0xff] %vm269_vm0, %v1543_v9  ;;  %277 = vst.msk [vmem:[#allocation2 + $0x38] sm:$0xff] %vm269_vm0, %v2090_v10  ;;  %v2099_v12 = vld [vmem:[%s2065_s27 + $0x68] sm:$0xff]  ;;  %v1509_v13 = vld [vmem:[%s2065_s27 + $0x19] sm:$0xff]  ;;  %vm366_vm1 = vcmask 64544   ;;  %vm463_vm2 = vcmask 97344  }
  0x25   : > { %320 = vrot.lane.b32.xlu0 %v287_v4, %s2639_s8  ;;  %278 = vst.msk [vmem:[#allocation2 + $0x40] sm:$0xff] %vm269_vm0, %v2096_v11  ;;  %279 = vst.msk [vmem:[#allocation2 + $0x48] sm:$0xff] %vm269_vm0, %v2099_v12  ;;  %v253_v14 = vld [vmem:[%s2065_s27] sm:$0xff]  ;;  %v254_v15 = vld [vmem:[%s2065_s27 + $0x8] sm:$0xff]  ;;  %vm561_vm3 = vcmask 130144   ;;  %vm658_vm4 = vcmask 162944  }
  0x26   : > { %417 = vrot.lane.b32.xlu1 %v384_v5, %s1947_s11  ;;  %270 = vst.msk [vmem:[#allocation2] sm:$0xff] %vm269_vm0, %v253_v14  ;;  %271 = vst.msk [vmem:[#allocation2 + $0x8] sm:$0xff] %vm269_vm0, %v254_v15  ;;  %v2113_v16 = vld [vmem:[%s2065_s27 + $0x78] sm:$0xff]  ;;  %v2116_v17 = vld [vmem:[%s2065_s27 + $0x80] sm:$0xff]  ;;  %vm755_vm5 = vcmask 195744   ;;  %vm853_vm6 = vcmask 228544  }
  0x27   : > { %280 = vst.msk [vmem:[#allocation2 + $0x50] sm:$0xff] %vm269_vm0, %v2113_v16  ;;  %281 = vst.msk [vmem:[#allocation2 + $0x58] sm:$0xff] %vm269_vm0, %v2116_v17  ;;  %v1510_v18 = vld [vmem:[%s2065_s27 + $0x21] sm:$0xff]  ;;  %v2134_v21 = vld [vmem:[%s2065_s27 + $0x90] sm:$0xff]  ;;  %vm950_vm7 = vcmask 261344   ;;  %vm1047_vm8 = vcmask 294144  }
  0x28   : > { %v1525_v19 = vld [vmem:[%s2065_s27 + $0x1a] sm:$0xff]  ;;  %v1526_v20 = vld [vmem:[%s2065_s27 + $0x22] sm:$0xff]  ;;  %282 = vst.msk [vmem:[#allocation2 + $0x60] sm:$0xff] %vm269_vm0, %v2134_v21  ;;  %v1557_v22 = vld [vmem:[%s2065_s27 + $0x31] sm:$0xff]  ;;  %vm1064_vm9 = vcmask 1047840   ;;  %v1954_v63 = vmov 0.0  }
  0x29   : > { %513 = vrot.lane.b32.xlu0 %v1493_v3, %s2643_s12  ;;  %v2142_v23 = vld [vmem:[%s2065_s27 + $0x98] sm:$0xff]  ;;  %v2164_v27 = vld [vmem:[%s2065_s27 + $0xa8] sm:$0xff]  ;;  %v2172_v29 = vld [vmem:[%s2065_s27 + $0xb0] sm:$0xff]  ;;  %s2651_s26 = smov 12   ;;  %p1590_p1 = scmp.ne.s32.totalorder %s1927_s21, 1 }
  0x2a   : > { %515 = vrot.lane.b32.xlu1 %v1494_v6, %s2643_s12  ;;  %283 = vst.msk [vmem:[#allocation2 + $0x68] sm:$0xff] %vm269_vm0, %v2142_v23  ;;  %v1558_v24 = vld [vmem:[%s2065_s27 + $0x39] sm:$0xff]  ;;  %284 = vst.msk [vmem:[#allocation2 + $0x70] sm:$0xff] %vm269_vm0, %v2164_v27  ;;  %v1559_v28 = vld [vmem:[%s2065_s27 + $0x49] sm:$0xff] }
  0x2b   : > { %v1573_v25 = vld [vmem:[%s2065_s27 + $0x32] sm:$0xff]  ;;  %v1574_v26 = vld [vmem:[%s2065_s27 + $0x3a] sm:$0xff]  ;;  %285 = vst.msk [vmem:[#allocation2 + $0x78] sm:$0xff] %vm269_vm0, %v2172_v29  ;;  %v1575_v31 = vld [vmem:[%s2065_s27 + $0x4a] sm:$0xff] }
  0x2c   : > { %v1560_v30 = vld [vmem:[%s2065_s27 + $0x51] sm:$0xff]  ;;  %v1561_v33 = vld [vmem:[%s2065_s27 + $0x61] sm:$0xff]  ;;  %v1562_v34 = vld [vmem:[%s2065_s27 + $0x69] sm:$0xff] }
  0x2d   : > { %610 = vrot.lane.b32.xlu0 %v1509_v13, %s1949_s13  ;;  %v1576_v32 = vld [vmem:[%s2065_s27 + $0x52] sm:$0xff]  ;;  %v1577_v35 = vld [vmem:[%s2065_s27 + $0x62] sm:$0xff]  ;;  %v1578_v36 = vld [vmem:[%s2065_s27 + $0x6a] sm:$0xff] }
  0x2e   : > { %322 = vrot.lane.b32.xlu1 %v1509_v13, %s2639_s8  ;;  %v1563_v43 = vld [vmem:[%s2065_s27 + $0x79] sm:$0xff]  ;;  %v1564_v48 = vld [vmem:[%s2065_s27 + $0x81] sm:$0xff]  ;;  %v1565_v0 = vld [vmem:[%s2065_s27 + $0x91] sm:$0xff] }
  0x2f   : > { %v1579_v49 = vld [vmem:[%s2065_s27 + $0x7a] sm:$0xff]  ;;  %v1580_v54 = vld [vmem:[%s2065_s27 + $0x82] sm:$0xff]  ;;  %v1581_v6 = vld [vmem:[%s2065_s27 + $0x92] sm:$0xff] }
  0x30   : > { %v1566_v5 = vld [vmem:[%s2065_s27 + $0x99] sm:$0xff] }
  0x31   : > { %612 = vrot.lane.b32.xlu0 %v1510_v18, %s1949_s13 }
  0x32   : > { %707 = vrot.lane.b32.xlu1 %v1525_v19, %s1950_s14 }
  0x35   : > { %324 = vrot.lane.b32.xlu0 %v1510_v18, %s2639_s8  ;;  %v1112_v18 = vld [vmem:[%s2633_s1 + $0x78] sm:$0xff] }
  0x36   : > { %419 = vrot.lane.b32.xlu1 %v1525_v19, %s1947_s11  ;;  %1643 = vmatprep.subr.mxu0 %v1112_v18 }
  0x37   : > { %1734 = vmatprep.subr.mxu1 %v1112_v18  ;;  %1644 = vmatpush3.msra.mxu0 %v1112_v18 }
  0x38   : > { %1750 = vmatpush3.msra.mxu1 %v1112_v18 }
  0x39   : > { %709 = vrot.lane.b32.xlu0 %v1526_v20, %s1950_s14 }
  0x3a   : > { %805 = vrot.lane.b32.xlu1 %v1541_v7, %s1951_s15 }
  0x3d   : > { %421 = vrot.lane.b32.xlu0 %v1526_v20, %s1947_s11 }
  0x3e   : > { %517 = vrot.lane.b32.xlu1 %v1541_v7, %s2643_s12 }
  0x41   : > { %807 = vrot.lane.b32.xlu0 %v1542_v8, %s1951_s15 }
  0x42   : > { %902 = vrot.lane.b32.xlu1 %v1557_v22, %s2645_s16 }
  0x45   : > { %519 = vrot.lane.b32.xlu0 %v1542_v8, %s2643_s12 }
  0x46   : > { %614 = vrot.lane.b32.xlu1 %v1557_v22, %s1949_s13 }
  0x49   : > { %904 = vrot.lane.b32.xlu0 %v1558_v24, %s2645_s16 }
  0x4a   : > { %999 = vrot.lane.b32.xlu1 %v1573_v25, %s2641_s17 }
  0x4d   : > { %326 = vrot.lane.b32.xlu0 %v1557_v22, %s2639_s8  ;;  %v1110_v22 = vld [vmem:[%s2633_s1 + $0x68] sm:$0xff] }
  0x4e   : > { %616 = vrot.lane.b32.xlu1 %v1558_v24, %s1949_s13 }
  0x51   : > { %711 = vrot.lane.b32.xlu0 %v1573_v25, %s1950_s14 }
  0x52   : > { %1001 = vrot.lane.b32.xlu1 %v1574_v26, %s2641_s17 }
  0x55   : > { %328 = vrot.lane.b32.xlu0 %v1558_v24, %s2639_s8 }
  0x56   : > { %423 = vrot.lane.b32.xlu1 %v1573_v25, %s1947_s11 }
  0x59   : > { %713 = vrot.lane.b32.xlu0 %v1574_v26, %s1950_s14 }
  0x5a   : > { %809 = vrot.lane.b32.xlu1 %v1543_v9, %s1951_s15 }
  0x5d   : > { %425 = vrot.lane.b32.xlu0 %v1574_v26, %s1947_s11  ;;  %v1109_v26 = vld [vmem:[%s2633_s1 + $0x60] sm:$0xff] }
  0x5e   : > { %521 = vrot.lane.b32.xlu1 %v1543_v9, %s2643_s12 }
  0x61   : > { %811 = vrot.lane.b32.xlu0 %v2090_v10, %s1951_s15 }
  0x62   : > { %906 = vrot.lane.b32.xlu1 %v1559_v28, %s2645_s16 }
  0x65   : > { %523 = vrot.lane.b32.xlu0 %v2090_v10, %s2643_s12 }
  0x66   : > { %618 = vrot.lane.b32.xlu1 %v1559_v28, %s1949_s13 }
  0x69   : > { %908 = vrot.lane.b32.xlu0 %v1560_v30, %s2645_s16 }
  0x6a   : > { %1003 = vrot.lane.b32.xlu1 %v1575_v31, %s2641_s17 }
  0x6d   : > { %330 = vrot.lane.b32.xlu0 %v1559_v28, %s2639_s8 }
  0x6e   : > { %620 = vrot.lane.b32.xlu1 %v1560_v30, %s1949_s13 }
  0x71   : > { %715 = vrot.lane.b32.xlu0 %v1575_v31, %s1950_s14 }
  0x72   : > { %1005 = vrot.lane.b32.xlu1 %v1576_v32, %s2641_s17 }
  0x75   : > { %332 = vrot.lane.b32.xlu0 %v1560_v30, %s2639_s8 }
  0x76   : > { %427 = vrot.lane.b32.xlu1 %v1575_v31, %s1947_s11  ;;  %v1107_v31 = vld [vmem:[%s2633_s1 + $0x50] sm:$0xff] }
  0x79   : > { %717 = vrot.lane.b32.xlu0 %v1576_v32, %s1950_s14 }
  0x7a   : > { %813 = vrot.lane.b32.xlu1 %v2096_v11, %s1951_s15 }
  0x7d   : > { %429 = vrot.lane.b32.xlu0 %v1576_v32, %s1947_s11  ;;  %v1568_v32 = vld [vmem:[%s2065_s27 + $0xb1] sm:$0xff] }
  0x7e   : > { %525 = vrot.lane.b32.xlu1 %v2096_v11, %s2643_s12  ;;  %v1582_v11 = vld [vmem:[%s2065_s27 + $0x9a] sm:$0xff] }
  0x81   : > { %815 = vrot.lane.b32.xlu0 %v2099_v12, %s1951_s15 }
  0x82   : > { %910 = vrot.lane.b32.xlu1 %v1561_v33, %s2645_s16 }
  0x85   : > { %527 = vrot.lane.b32.xlu0 %v2099_v12, %s2643_s12 }
  0x86   : > { %622 = vrot.lane.b32.xlu1 %v1561_v33, %s1949_s13 }
  0x89   : > { %912 = vrot.lane.b32.xlu0 %v1562_v34, %s2645_s16 }
  0x8a   : > { %1007 = vrot.lane.b32.xlu1 %v1577_v35, %s2641_s17 }
  0x8d   : > { %334 = vrot.lane.b32.xlu0 %v1561_v33, %s2639_s8  ;;  %v1583_v33 = vld [vmem:[%s2065_s27 + $0xaa] sm:$0xff] }
  0x8e   : > { %624 = vrot.lane.b32.xlu1 %v1562_v34, %s1949_s13 }
  0x91   : > { %719 = vrot.lane.b32.xlu0 %v1577_v35, %s1950_s14 }
  0x92   : > { %1009 = vrot.lane.b32.xlu1 %v1578_v36, %s2641_s17 }
  0x93   : > { %v319_v37 = vpop.permute.xlu0 %318 }
  0x94   : > { %v416_v38 = vpop.permute.xlu1 %415  ;;  %367 = vst.msk [vmem:[#allocation2] sm:$0xff] %vm366_vm1, %v319_v37 }
  0x95   : > { %464 = vst.msk [vmem:[#allocation2] sm:$0xff] %vm463_vm2, %v416_v38  ;;  %336 = vrot.lane.b32.xlu0 %v1562_v34, %s2639_s8 }
  0x96   : > { %431 = vrot.lane.b32.xlu1 %v1577_v35, %s1947_s11 }
  0x97   : > { %v321_v39 = vpop.permute.xlu0 %320 }
  0x98   : > { %v418_v40 = vpop.permute.xlu1 %417  ;;  %368 = vst.msk [vmem:[#allocation2 + $0x8] sm:$0xff] %vm366_vm1, %v321_v39  ;;  %v1104_v39 = vld [vmem:[%s2633_s1 + $0x38] sm:$0xff] }
  0x99   : > { %465 = vst.msk [vmem:[#allocation2 + $0x8] sm:$0xff] %vm463_vm2, %v418_v40  ;;  %721 = vrot.lane.b32.xlu0 %v1578_v36, %s1950_s14  ;;  %v1584_v40 = vld [vmem:[%s2065_s27 + $0xb2] sm:$0xff] }
  0x9a   : > { %817 = vrot.lane.b32.xlu1 %v2113_v16, %s1951_s15 }
  0x9b   : > { %v514_v41 = vpop.permute.xlu0 %513 }
  0x9c   : > { %v516_v42 = vpop.permute.xlu1 %515  ;;  %562 = vst.msk [vmem:[#allocation2] sm:$0xff] %vm561_vm3, %v514_v41 }
  0x9d   : > { %563 = vst.msk [vmem:[#allocation2 + $0x8] sm:$0xff] %vm561_vm3, %v516_v42  ;;  %433 = vrot.lane.b32.xlu0 %v1578_v36, %s1947_s11  ;;  %v1106_v36 = vld [vmem:[%s2633_s1 + $0x48] sm:$0xff] }
  0x9e   : > { %529 = vrot.lane.b32.xlu1 %v2113_v16, %s2643_s12 }
  0x9f   : > { %v611_v44 = vpop.permute.xlu0 %610 }
  0xa0   : > { %v323_v45 = vpop.permute.xlu1 %322  ;;  %659 = vst.msk [vmem:[#allocation2] sm:$0xff] %vm658_vm4, %v611_v44  ;;  %v1102_v44 = vld [vmem:[%s2633_s1 + $0x28] sm:$0xff] }
  0xa1   : > { %369 = vst.msk [vmem:[#allocation2 + $0x10] sm:$0xff] %vm366_vm1, %v323_v45  ;;  %819 = vrot.lane.b32.xlu0 %v2116_v17, %s1951_s15 }
  0xa2   : > { %914 = vrot.lane.b32.xlu1 %v1563_v43, %s2645_s16 }
  0xa3   : > { %v613_v46 = vpop.permute.xlu0 %612 }
  0xa4   : > { %v708_v47 = vpop.permute.xlu1 %707  ;;  %660 = vst.msk [vmem:[#allocation2 + $0x8] sm:$0xff] %vm658_vm4, %v613_v46 }
  0xa5   : > { %756 = vst.msk [vmem:[#allocation2] sm:$0xff] %vm755_vm5, %v708_v47  ;;  %531 = vrot.lane.b32.xlu0 %v2116_v17, %s2643_s12  ;;  %v1101_v47 = vld [vmem:[%s2633_s1 + $0x20] sm:$0xff] }
  0xa6   : > { %626 = vrot.lane.b32.xlu1 %v1563_v43, %s1949_s13 }
  0xa7   : > { %v325_v50 = vpop.permute.xlu0 %324 }
  0xa8   : > { %v420_v51 = vpop.permute.xlu1 %419  ;;  %370 = vst.msk [vmem:[#allocation2 + $0x18] sm:$0xff] %vm366_vm1, %v325_v50 }
  0xa9   : > { %466 = vst.msk [vmem:[#allocation2 + $0x10] sm:$0xff] %vm463_vm2, %v420_v51  ;;  %916 = vrot.lane.b32.xlu0 %v1564_v48, %s2645_s16  ;;  %v1100_v51 = vld [vmem:[%s2633_s1 + $0x18] sm:$0xff] }
  0xaa   : > { %1011 = vrot.lane.b32.xlu1 %v1579_v49, %s2641_s17 }
  0xab   : > { %v710_v52 = vpop.permute.xlu0 %709 }
  0xac   : > { %v806_v53 = vpop.permute.xlu1 %805  ;;  %757 = vst.msk [vmem:[#allocation2 + $0x8] sm:$0xff] %vm755_vm5, %v710_v52 }
  0xad   : > { %854 = vst.msk [vmem:[#allocation2] sm:$0xff] %vm853_vm6, %v806_v53  ;;  %338 = vrot.lane.b32.xlu0 %v1563_v43, %s2639_s8  ;;  %v1103_v43 = vld [vmem:[%s2633_s1 + $0x30] sm:$0xff] }
  0xae   : > { %628 = vrot.lane.b32.xlu1 %v1564_v48, %s1949_s13  ;;  %v1099_v53 = vld [vmem:[%s2633_s1 + $0x10] sm:$0xff] }
  0xaf   : > { %v422_v55 = vpop.permute.xlu0 %421 }
  0xb0   : > { %v518_v56 = vpop.permute.xlu1 %517  ;;  %467 = vst.msk [vmem:[#allocation2 + $0x18] sm:$0xff] %vm463_vm2, %v422_v55 }
  0xb1   : > { %564 = vst.msk [vmem:[#allocation2 + $0x10] sm:$0xff] %vm561_vm3, %v518_v56  ;;  %723 = vrot.lane.b32.xlu0 %v1579_v49, %s1950_s14  ;;  %v1098_v56 = vld [vmem:[%s2633_s1 + $0x8] sm:$0xff] }
  0xb2   : > { %1013 = vrot.lane.b32.xlu1 %v1580_v54, %s2641_s17 }
  0xb3   : > { %v808_v57 = vpop.permute.xlu0 %807 }
  0xb4   : > { %v903_v58 = vpop.permute.xlu1 %902  ;;  %855 = vst.msk [vmem:[#allocation2 + $0x8] sm:$0xff] %vm853_vm6, %v808_v57  ;;  %v1554_v57 = vld [vmem:[%s2065_s27 + $0xc8] sm:$0xff] }
  0xb5   : > { %951 = vst.msk [vmem:[#allocation2] sm:$0xff] %vm950_vm7, %v903_v58  ;;  %340 = vrot.lane.b32.xlu0 %v1564_v48, %s2639_s8  ;;  %v1553_v48 = vld [vmem:[%s2065_s27 + $0xc0] sm:$0xff] }
  0xb6   : > { %435 = vrot.lane.b32.xlu1 %v1579_v49, %s1947_s11  ;;  %v1569_v58 = vld [vmem:[%s2065_s27 + $0xc1] sm:$0xff] }
  0xb7   : > { %v520_v59 = vpop.permute.xlu0 %519 }
  0xb8   : > { %v615_v60 = vpop.permute.xlu1 %614  ;;  %565 = vst.msk [vmem:[#allocation2 + $0x18] sm:$0xff] %vm561_vm3, %v520_v59 }
  0xb9   : > { %661 = vst.msk [vmem:[#allocation2 + $0x10] sm:$0xff] %vm658_vm4, %v615_v60  ;;  %725 = vrot.lane.b32.xlu0 %v1580_v54, %s1950_s14 }
  0xba   : > { %821 = vrot.lane.b32.xlu1 %v2134_v21, %s1951_s15 }
  0xbb   : > { %v905_v61 = vpop.permute.xlu0 %904 }
  0xbc   : > { %v1000_v62 = vpop.permute.xlu1 %999  ;;  %952 = vst.msk [vmem:[#allocation2 + $0x8] sm:$0xff] %vm950_vm7, %v905_v61  ;;  %v1097_v61 = vld [vmem:[%s2633_s1] sm:$0xff] }
  0xbd   : > { %1048 = vst.msk [vmem:[#allocation2] sm:$0xff] %vm1047_vm8, %v1000_v62  ;;  %437 = vrot.lane.b32.xlu0 %v1580_v54, %s1947_s11 }
  0xbe   : > { %1065 = vst.msk [vmem:[#allocation2] sm:$0xff] %vm1064_vm9, %v1954_v63  ;;  %533 = vrot.lane.b32.xlu1 %v2134_v21, %s2643_s12  ;;  %v1111_v21 = vld [vmem:[%s2633_s1 + $0x70] sm:$0xff] }
  0xbf   : > { %v327_v1 = vpop.permute.xlu0 %326  ;;  %1645 = vmatprep.subr.mxu0 %v1111_v21  ;;  %1735 = vmatprep.subr.mxu1 %v1111_v21 }
  0xc0   : > { %v617_v2 = vpop.permute.xlu1 %616  ;;  %371 = vst.msk [vmem:[#allocation2 + $0x20] sm:$0xff] %vm366_vm1, %v327_v1  ;;  %1646 = vmatpush3.msra.mxu0 %v1111_v21  ;;  %1751 = vmatpush3.msra.mxu1 %v1111_v21 }
  0xc1   : > { %662 = vst.msk [vmem:[#allocation2 + $0x18] sm:$0xff] %vm658_vm4, %v617_v2  ;;  %823 = vrot.lane.b32.xlu0 %v2142_v23, %s1951_s15  ;;  %1647 = vmatprep.subr.mxu0 %v1110_v22 }
  0xc2   : > { %918 = vrot.lane.b32.xlu1 %v1565_v0, %s2645_s16  ;;  %1736 = vmatprep.subr.mxu1 %v1110_v22 }
  0xc3   : > { %v712_v3 = vpop.permute.xlu0 %711  ;;  %1648 = vmatpush3.msra.mxu0 %v1110_v22  ;;  %1752 = vmatpush3.msra.mxu1 %v1110_v22 }
  0xc4   : > { %v1002_v4 = vpop.permute.xlu1 %1001  ;;  %758 = vst.msk [vmem:[#allocation2 + $0x10] sm:$0xff] %vm755_vm5, %v712_v3  ;;  %1649 = vmatprep.subr.mxu0 %v1109_v26  ;;  %1737 = vmatprep.subr.mxu1 %v1109_v26 }
  0xc5   : > { %1049 = vst.msk [vmem:[#allocation2 + $0x8] sm:$0xff] %vm1047_vm8, %v1002_v4  ;;  %535 = vrot.lane.b32.xlu0 %v2142_v23, %s2643_s12  ;;  %v1567_v23 = vld [vmem:[%s2065_s27 + $0xa9] sm:$0xff]  ;;  %1650 = vmatpush3.msra.mxu0 %v1109_v26  ;;  %v1081_v52 = vld [vmem:[#allocation2] sm:$0xff] }
  0xc6   : > { %1066 = vst.msk [vmem:[#allocation2 + $0x8] sm:$0xff] %vm1064_vm9, %v1954_v63  ;;  %630 = vrot.lane.b32.xlu1 %v1565_v0, %s1949_s13  ;;  %1753 = vmatpush3.msra.mxu1 %v1109_v26  ;;  %v1570_v4 = vld [vmem:[%s2065_s27 + $0xc9] sm:$0xff] }
  0xc7   : > { %v329_v7 = vpop.permute.xlu0 %328  ;;  %1675 = vmatprep.mubr.f32.mxu0 %v1081_v52 }
  0xc8   : > { %v424_v8 = vpop.permute.xlu1 %423  ;;  %372 = vst.msk [vmem:[#allocation2 + $0x28] sm:$0xff] %vm366_vm1, %v329_v7 }
  0xc9   : > { %468 = vst.msk [vmem:[#allocation2 + $0x20] sm:$0xff] %vm463_vm2, %v424_v8  ;;  %920 = vrot.lane.b32.xlu0 %v1566_v5, %s2645_s16 }
  0xca   : > { %1015 = vrot.lane.b32.xlu1 %v1581_v6, %s2641_s17 }
  0xcb   : > { %v714_v9 = vpop.permute.xlu0 %713 }
  0xcc   : > { %v810_v10 = vpop.permute.xlu1 %809  ;;  %759 = vst.msk [vmem:[#allocation2 + $0x18] sm:$0xff] %vm755_vm5, %v714_v9 }
  0xcd   : > { %856 = vst.msk [vmem:[#allocation2 + $0x10] sm:$0xff] %vm853_vm6, %v810_v10  ;;  %342 = vrot.lane.b32.xlu0 %v1565_v0, %s2639_s8  ;;  %v1082_v62 = vld [vmem:[#allocation2 + $0x8] sm:$0xff] }
  0xce   : > { %632 = vrot.lane.b32.xlu1 %v1566_v5, %s1949_s13 }
  0xcf   : > { %v426_v12 = vpop.permute.xlu0 %425 }
  0xd0   : > { %v522_v13 = vpop.permute.xlu1 %521  ;;  %469 = vst.msk [vmem:[#allocation2 + $0x28] sm:$0xff] %vm463_vm2, %v426_v12  ;;  %v1586_v12 = vld [vmem:[%s2065_s27 + $0xca] sm:$0xff] }
  0xd1   : > { %566 = vst.msk [vmem:[#allocation2 + $0x20] sm:$0xff] %vm561_vm3, %v522_v13  ;;  %727 = vrot.lane.b32.xlu0 %v1581_v6, %s1950_s14 }
  0xd2   : > { %1017 = vrot.lane.b32.xlu1 %v1582_v11, %s2641_s17 }
  0xd3   : > { %v812_v14 = vpop.permute.xlu0 %811 }
  0xd4   : > { %v907_v15 = vpop.permute.xlu1 %906  ;;  %857 = vst.msk [vmem:[#allocation2 + $0x18] sm:$0xff] %vm853_vm6, %v812_v14 }
  0xd5   : > { %953 = vst.msk [vmem:[#allocation2 + $0x10] sm:$0xff] %vm950_vm7, %v907_v15  ;;  %344 = vrot.lane.b32.xlu0 %v1566_v5, %s2639_s8  ;;  %s2649_s8 = smov 32   ;;  %v1585_v5 = vld [vmem:[%s2065_s27 + $0xc2] sm:$0xff]  ;;  %v1555_v15 = vld [vmem:[%s2065_s27 + $0xd8] sm:$0xff] }
  0xd6   : > { %439 = vrot.lane.b32.xlu1 %v1581_v6, %s1947_s11 }
  0xd7   : > { %v524_v16 = vpop.permute.xlu0 %523 }
  0xd8   : > { %v619_v17 = vpop.permute.xlu1 %618  ;;  %567 = vst.msk [vmem:[#allocation2 + $0x28] sm:$0xff] %vm561_vm3, %v524_v16  ;;  %v1556_v16 = vld [vmem:[%s2065_s27 + $0xe0] sm:$0xff] }
  0xd9   : > { %663 = vst.msk [vmem:[#allocation2 + $0x20] sm:$0xff] %vm658_vm4, %v619_v17  ;;  %729 = vrot.lane.b32.xlu0 %v1582_v11, %s1950_s14 }
  0xda   : > { %825 = vrot.lane.b32.xlu1 %v2164_v27, %s1951_s15 }
  0xdb   : > { %v909_v19 = vpop.permute.xlu0 %908 }
  0xdc   : > { %v1004_v20 = vpop.permute.xlu1 %1003  ;;  %954 = vst.msk [vmem:[#allocation2 + $0x18] sm:$0xff] %vm950_vm7, %v909_v19  ;;  %v1571_v19 = vld [vmem:[%s2065_s27 + $0xd9] sm:$0xff] }
  0xdd   : > { %1050 = vst.msk [vmem:[#allocation2 + $0x10] sm:$0xff] %vm1047_vm8, %v1004_v20  ;;  %441 = vrot.lane.b32.xlu0 %v1582_v11, %s1947_s11  ;;  %v1572_v20 = vld [vmem:[%s2065_s27 + $0xe1] sm:$0xff] }
  0xde   : > { %1067 = vst.msk [vmem:[#allocation2 + $0x10] sm:$0xff] %vm1064_vm9, %v1954_v63  ;;  %537 = vrot.lane.b32.xlu1 %v2164_v27, %s2643_s12  ;;  %v1108_v27 = vld [vmem:[%s2633_s1 + $0x58] sm:$0xff] }
  0xdf   : > { %v331_v24 = vpop.permute.xlu0 %330  ;;  %1651 = vmatprep.subr.mxu0 %v1108_v27  ;;  %1738 = vmatprep.subr.mxu1 %v1108_v27 }
  0xe0   : > { %v621_v25 = vpop.permute.xlu1 %620  ;;  %373 = vst.msk [vmem:[#allocation2 + $0x30] sm:$0xff] %vm366_vm1, %v331_v24  ;;  %1652 = vmatpush3.msra.mxu0 %v1108_v27  ;;  %1754 = vmatpush3.msra.mxu1 %v1108_v27  ;;  %v1588_v24 = vld [vmem:[%s2065_s27 + $0xe2] sm:$0xff] }
  0xe1   : > { %664 = vst.msk [vmem:[#allocation2 + $0x28] sm:$0xff] %vm658_vm4, %v621_v25  ;;  %827 = vrot.lane.b32.xlu0 %v2172_v29, %s1951_s15  ;;  %1653 = vmatprep.subr.mxu0 %v1107_v31 }
  0xe2   : > { %922 = vrot.lane.b32.xlu1 %v1567_v23, %s2645_s16  ;;  %1739 = vmatprep.subr.mxu1 %v1107_v31 }
  0xe3   : > { %v716_v28 = vpop.permute.xlu0 %715  ;;  %1654 = vmatpush3.msra.mxu0 %v1107_v31  ;;  %1755 = vmatpush3.msra.mxu1 %v1107_v31 }
  0xe4   : > { %v1006_v30 = vpop.permute.xlu1 %1005  ;;  %760 = vst.msk [vmem:[#allocation2 + $0x20] sm:$0xff] %vm755_vm5, %v716_v28  ;;  %1655 = vmatprep.subr.mxu0 %v1106_v36  ;;  %1740 = vmatprep.subr.mxu1 %v1106_v36 }
  0xe5   : > { %1051 = vst.msk [vmem:[#allocation2 + $0x18] sm:$0xff] %vm1047_vm8, %v1006_v30  ;;  %539 = vrot.lane.b32.xlu0 %v2172_v29, %s2643_s12  ;;  %v1105_v29 = vld [vmem:[%s2633_s1 + $0x40] sm:$0xff]  ;;  %1656 = vmatpush3.msra.mxu0 %v1106_v36  ;;  %v1083_v2 = vld [vmem:[#allocation2 + $0x10] sm:$0xff] }
  0xe6   : > { %1068 = vst.msk [vmem:[#allocation2 + $0x18] sm:$0xff] %vm1064_vm9, %v1954_v63  ;;  %634 = vrot.lane.b32.xlu1 %v1567_v23, %s1949_s13  ;;  %1756 = vmatpush3.msra.mxu1 %v1106_v36 }
  0xe7   : > { %v333_v34 = vpop.permute.xlu0 %332  ;;  %1657 = vmatprep.subr.mxu0 %v1105_v29  ;;  %1741 = vmatprep.subr.mxu1 %v1105_v29 }
  0xe8   : > { %v428_v35 = vpop.permute.xlu1 %427  ;;  %374 = vst.msk [vmem:[#allocation2 + $0x38] sm:$0xff] %vm366_vm1, %v333_v34  ;;  %1658 = vmatpush3.msra.mxu0 %v1105_v29  ;;  %1757 = vmatpush3.msra.mxu1 %v1105_v29 }
  0xe9   : > { %470 = vst.msk [vmem:[#allocation2 + $0x30] sm:$0xff] %vm463_vm2, %v428_v35  ;;  %924 = vrot.lane.b32.xlu0 %v1568_v32, %s2645_s16  ;;  %s2650_s16 = smov 4   ;;  %1659 = vmatprep.subr.mxu0 %v1104_v39 }
  0xea   : > { %1019 = vrot.lane.b32.xlu1 %v1583_v33, %s2649_s8  ;;  %1742 = vmatprep.subr.mxu1 %v1104_v39 }
  0xeb   : > { %v718_v37 = vpop.permute.xlu0 %717  ;;  %1660 = vmatpush3.msra.mxu0 %v1104_v39  ;;  %1758 = vmatpush3.msra.mxu1 %v1104_v39 }
  0xec   : > { %v814_v38 = vpop.permute.xlu1 %813  ;;  %761 = vst.msk [vmem:[#allocation2 + $0x28] sm:$0xff] %vm755_vm5, %v718_v37  ;;  %1661 = vmatprep.subr.mxu0 %v1103_v43  ;;  %1743 = vmatprep.subr.mxu1 %v1103_v43 }
  0xed   : > { %858 = vst.msk [vmem:[#allocation2 + $0x20] sm:$0xff] %vm853_vm6, %v814_v38  ;;  %346 = vrot.lane.b32.xlu0 %v1567_v23, %s2650_s16  ;;  %1662 = vmatpush3.msra.mxu0 %v1103_v43  ;;  %v1084_v3 = vld [vmem:[#allocation2 + $0x18] sm:$0xff] }
  0xee   : > { %636 = vrot.lane.b32.xlu1 %v1568_v32, %s1949_s13  ;;  %1759 = vmatpush3.msra.mxu1 %v1103_v43  ;;  %v1587_v23 = vld [vmem:[%s2065_s27 + $0xda] sm:$0xff] }
  0xef   : > { %v430_v41 = vpop.permute.xlu0 %429  ;;  %1663 = vmatprep.subr.mxu0 %v1102_v44  ;;  %1744 = vmatprep.subr.mxu1 %v1102_v44 }
  0xf0   : > { %v526_v42 = vpop.permute.xlu1 %525  ;;  %471 = vst.msk [vmem:[#allocation2 + $0x38] sm:$0xff] %vm463_vm2, %v430_v41  ;;  %1664 = vmatpush3.msra.mxu0 %v1102_v44  ;;  %1760 = vmatpush3.msra.mxu1 %v1102_v44 }
  0xf1   : > { %568 = vst.msk [vmem:[#allocation2 + $0x30] sm:$0xff] %vm561_vm3, %v526_v42  ;;  %731 = vrot.lane.b32.xlu0 %v1583_v33, %s1950_s14  ;;  %1665 = vmatprep.subr.mxu0 %v1101_v47 }
  0xf2   : > { %1021 = vrot.lane.b32.xlu1 %v1584_v40, %s2649_s8  ;;  %1745 = vmatprep.subr.mxu1 %v1101_v47 }
  0xf3   : > { %v816_v45 = vpop.permute.xlu0 %815  ;;  %1666 = vmatpush3.msra.mxu0 %v1101_v47  ;;  %1761 = vmatpush3.msra.mxu1 %v1101_v47 }
  0xf4   : > { %v911_v46 = vpop.permute.xlu1 %910  ;;  %859 = vst.msk [vmem:[#allocation2 + $0x28] sm:$0xff] %vm853_vm6, %v816_v45  ;;  %1667 = vmatprep.subr.mxu0 %v1100_v51  ;;  %1746 = vmatprep.subr.mxu1 %v1100_v51 }
  0xf5   : > { %955 = vst.msk [vmem:[#allocation2 + $0x20] sm:$0xff] %vm950_vm7, %v911_v46  ;;  %348 = vrot.lane.b32.xlu0 %v1568_v32, %s2650_s16  ;;  %1668 = vmatpush3.msra.mxu0 %v1100_v51 }
  0xf6   : > { %443 = vrot.lane.b32.xlu1 %v1583_v33, %s1947_s11  ;;  %1669 = vmatprep.subr.mxu0 %v1099_v53 }
  0xf7   : > { %v528_v49 = vpop.permute.xlu0 %527  ;;  %1762 = vmatpush3.msra.mxu1 %v1100_v51  ;;  %1670 = vmatpush3.msra.mxu0 %v1099_v53 }
  0xf8   : > { %v623_v50 = vpop.permute.xlu1 %622  ;;  %569 = vst.msk [vmem:[#allocation2 + $0x38] sm:$0xff] %vm561_vm3, %v528_v49  ;;  %1747 = vmatprep.subr.mxu1 %v1099_v53  ;;  %1671 = vmatprep.subr.mxu0 %v1098_v56 }
  0xf9   : > { %665 = vst.msk [vmem:[#allocation2 + $0x30] sm:$0xff] %vm658_vm4, %v623_v50  ;;  %733 = vrot.lane.b32.xlu0 %v1584_v40, %s1950_s14  ;;  %1763 = vmatpush3.msra.mxu1 %v1099_v53 }
  0xfa   : > { %829 = vrot.lane.b32.xlu1 %v1553_v48, %s1951_s15  ;;  %1672 = vmatpush3.msra.mxu0 %v1098_v56 }
  0xfb   : > { %v913_v54 = vpop.permute.xlu0 %912  ;;  %1748 = vmatprep.subr.mxu1 %v1098_v56  ;;  %1673 = vmatprep.subr.mxu0 %v1097_v61 }
  0xfc   : > { %v1008_v55 = vpop.permute.xlu1 %1007  ;;  %956 = vst.msk [vmem:[#allocation2 + $0x28] sm:$0xff] %vm950_vm7, %v913_v54  ;;  %1764 = vmatpush3.msra.mxu1 %v1098_v56  ;;  %1674 = vmatpush3.msra.mxu0 %v1097_v61 }
  0xfd   : > { %1052 = vst.msk [vmem:[#allocation2 + $0x20] sm:$0xff] %vm1047_vm8, %v1008_v55  ;;  %445 = vrot.lane.b32.xlu0 %v1584_v40, %s1947_s11  ;;  %s2652_s11 = smov 28   ;;  %1749 = vmatprep.subr.mxu1 %v1097_v61 }
  0xfe   : > { %1069 = vst.msk [vmem:[#allocation2 + $0x20] sm:$0xff] %vm1064_vm9, %v1954_v63  ;;  %541 = vrot.lane.b32.xlu1 %v1553_v48, %s2651_s26  ;;  %1676 = vmatmul.mubr.f32.vlgmr.msra.gmra.mxu0 %v1082_v62 }
  0xff   : > { %v335_v59 = vpop.permute.xlu0 %334  ;;  %1765 = vmatpush3.msra.mxu1 %v1097_v61  ;;  %1678 = vmatprep.mubr.f32.mxu0 %v1083_v2 }
 0x100   : > { %v625_v60 = vpop.permute.xlu1 %624  ;;  %375 = vst.msk [vmem:[#allocation2 + $0x40] sm:$0xff] %vm366_vm1, %v335_v59 }
 0x101   : > { %666 = vst.msk [vmem:[#allocation2 + $0x38] sm:$0xff] %vm658_vm4, %v625_v60  ;;  %831 = vrot.lane.b32.xlu0 %v1554_v57, %s1951_s15 }
 0x102   : > { %926 = vrot.lane.b32.xlu1 %v1569_v58, %s2652_s11  ;;  %1679 = vmatmul.mubr.f32.gmra.mxu0 %v1084_v3 }
 0x103   : > { %v720_v0 = vpop.permute.xlu0 %719 }
 0x104   : > { %v1010_v1 = vpop.permute.xlu1 %1009  ;;  %762 = vst.msk [vmem:[#allocation2 + $0x30] sm:$0xff] %vm755_vm5, %v720_v0 }
 0x105   : > { %1053 = vst.msk [vmem:[#allocation2 + $0x28] sm:$0xff] %vm1047_vm8, %v1010_v1  ;;  %543 = vrot.lane.b32.xlu0 %v1554_v57, %s2651_s26  ;;  %v1085_v8 = vld [vmem:[#allocation2 + $0x20] sm:$0xff] }
 0x106   : > { %1070 = vst.msk [vmem:[#allocation2 + $0x28] sm:$0xff] %vm1064_vm9, %v1954_v63  ;;  %638 = vrot.lane.b32.xlu1 %v1569_v58, %s1949_s13  ;;  %1681 = vmatprep.mubr.f32.mxu0 %v1085_v8 }
 0x107   : > { %v337_v6 = vpop.permute.xlu0 %336 }
 0x108   : > { %v432_v7 = vpop.permute.xlu1 %431  ;;  %376 = vst.msk [vmem:[#allocation2 + $0x48] sm:$0xff] %vm366_vm1, %v337_v6 }
 0x109   : > { %472 = vst.msk [vmem:[#allocation2 + $0x40] sm:$0xff] %vm463_vm2, %v432_v7  ;;  %928 = vrot.lane.b32.xlu0 %v1570_v4, %s2652_s11 }
 0x10a   : > { %1023 = vrot.lane.b32.xlu1 %v1585_v5, %s2649_s8 }
 0x10b   : > { %v722_v9 = vpop.permute.xlu0 %721 }
 0x10c   : > { %v818_v10 = vpop.permute.xlu1 %817  ;;  %763 = vst.msk [vmem:[#allocation2 + $0x38] sm:$0xff] %vm755_vm5, %v722_v9 }
 0x10d   : > { %860 = vst.msk [vmem:[#allocation2 + $0x30] sm:$0xff] %vm853_vm6, %v818_v10  ;;  %v1086_v11 = vld [vmem:[#allocation2 + $0x28] sm:$0xff]  ;;  %640 = vrot.lane.b32.xlu0 %v1570_v4, %s1949_s13 }
 0x10e   : > { %735 = vrot.lane.b32.xlu1 %v1585_v5, %s1950_s14  ;;  %1682 = vmatmul.mubr.f32.gmra.mxu0 %v1086_v11 }
 0x10f   : > { %v434_v13 = vpop.permute.xlu0 %433 }
 0x110   : > { %v530_v14 = vpop.permute.xlu1 %529  ;;  %473 = vst.msk [vmem:[#allocation2 + $0x48] sm:$0xff] %vm463_vm2, %v434_v13 }
 0x111   : > { %570 = vst.msk [vmem:[#allocation2 + $0x40] sm:$0xff] %vm561_vm3, %v530_v14  ;;  %1025 = vrot.lane.b32.xlu0 %v1586_v12, %s2649_s8 }
 0x112   : > { %737 = vrot.lane.b32.xlu1 %v1586_v12, %s1950_s14 }
 0x113   : > { %v820_v17 = vpop.permute.xlu0 %819 }
 0x114   : > { %v915_v18 = vpop.permute.xlu1 %914  ;;  %861 = vst.msk [vmem:[#allocation2 + $0x38] sm:$0xff] %vm853_vm6, %v820_v17 }
 0x115   : > { %957 = vst.msk [vmem:[#allocation2 + $0x30] sm:$0xff] %vm950_vm7, %v915_v18  ;;  %833 = vrot.lane.b32.xlu0 %v1555_v15, %s1951_s15 }
 0x116   : > { %835 = vrot.lane.b32.xlu1 %v1556_v16, %s1951_s15 }
 0x117   : > { %v532_v21 = vpop.permute.xlu0 %531 }
 0x118   : > { %v627_v22 = vpop.permute.xlu1 %626  ;;  %571 = vst.msk [vmem:[#allocation2 + $0x48] sm:$0xff] %vm561_vm3, %v532_v21 }
 0x119   : > { %667 = vst.msk [vmem:[#allocation2 + $0x40] sm:$0xff] %vm658_vm4, %v627_v22  ;;  %930 = vrot.lane.b32.xlu0 %v1571_v19, %s2652_s11 }
 0x11a   : > { %932 = vrot.lane.b32.xlu1 %v1572_v20, %s2652_s11 }
 0x11b   : > { %v917_v25 = vpop.permute.xlu0 %916 }
 0x11c   : > { %v1012_v26 = vpop.permute.xlu1 %1011  ;;  %958 = vst.msk [vmem:[#allocation2 + $0x38] sm:$0xff] %vm950_vm7, %v917_v25 }
 0x11d   : > { %1054 = vst.msk [vmem:[#allocation2 + $0x30] sm:$0xff] %vm1047_vm8, %v1012_v26  ;;  %1027 = vrot.lane.b32.xlu0 %v1587_v23, %s2649_s8 }
 0x11e   : > { %1071 = vst.msk [vmem:[#allocation2 + $0x30] sm:$0xff] %vm1064_vm9, %v1954_v63  ;;  %1029 = vrot.lane.b32.xlu1 %v1588_v24, %s2649_s8 }
 0x11f   : > { %v339_v27 = vpop.permute.xlu0 %338 }
 0x120   : > { %v629_v28 = vpop.permute.xlu1 %628  ;;  %377 = vst.msk [vmem:[#allocation2 + $0x50] sm:$0xff] %vm366_vm1, %v339_v27 }
 0x121   : > { %668 = vst.msk [vmem:[#allocation2 + $0x48] sm:$0xff] %vm658_vm4, %v629_v28 }
 0x123   : > { %v724_v30 = vpop.permute.xlu0 %723 }
 0x124   : > { %v1014_v31 = vpop.permute.xlu1 %1013  ;;  %764 = vst.msk [vmem:[#allocation2 + $0x40] sm:$0xff] %vm755_vm5, %v724_v30 }
 0x125   : > { %1055 = vst.msk [vmem:[#allocation2 + $0x38] sm:$0xff] %vm1047_vm8, %v1014_v31  ;;  %v1087_v32 = vld [vmem:[#allocation2 + $0x30] sm:$0xff] }
 0x126   : > { %1072 = vst.msk [vmem:[#allocation2 + $0x38] sm:$0xff] %vm1064_vm9, %v1954_v63  ;;  %1684 = vmatprep.mubr.f32.mxu0 %v1087_v32 }
 0x127   : > { %v341_v33 = vpop.permute.xlu0 %340 }
 0x128   : > { %v436_v34 = vpop.permute.xlu1 %435  ;;  %378 = vst.msk [vmem:[#allocation2 + $0x58] sm:$0xff] %vm366_vm1, %v341_v33 }
 0x129   : > { %474 = vst.msk [vmem:[#allocation2 + $0x50] sm:$0xff] %vm463_vm2, %v436_v34 }
 0x12b   : > { %v726_v35 = vpop.permute.xlu0 %725 }
 0x12c   : > { %v822_v36 = vpop.permute.xlu1 %821  ;;  %765 = vst.msk [vmem:[#allocation2 + $0x48] sm:$0xff] %vm755_vm5, %v726_v35  ;;  %v1589_v35 = vld [vmem:[%s2634_s2] ss:$0 sm:$0xff] }
 0x12d   : > { %862 = vst.msk [vmem:[#allocation2 + $0x40] sm:$0xff] %vm853_vm6, %v822_v36  ;;  %v1088_v29 = vld [vmem:[#allocation2 + $0x38] sm:$0xff] }
 0x12e   : > { %1685 = vmatmul.mubr.f32.gmra.mxu0 %v1088_v29 }
 0x12f   : > { %v438_v37 = vpop.permute.xlu0 %437 }
 0x130   : > { %v534_v38 = vpop.permute.xlu1 %533  ;;  %475 = vst.msk [vmem:[#allocation2 + $0x58] sm:$0xff] %vm463_vm2, %v438_v37 }
 0x131   : > { %572 = vst.msk [vmem:[#allocation2 + $0x50] sm:$0xff] %vm561_vm3, %v534_v38 }
 0x133   : > { %v824_v39 = vpop.permute.xlu0 %823 }
 0x134   : > { %v919_v40 = vpop.permute.xlu1 %918  ;;  %863 = vst.msk [vmem:[#allocation2 + $0x48] sm:$0xff] %vm853_vm6, %v824_v39 }
 0x135   : > { %959 = vst.msk [vmem:[#allocation2 + $0x40] sm:$0xff] %vm950_vm7, %v919_v40 }
 0x137   : > { %v536_v41 = vpop.permute.xlu0 %535 }
 0x138   : > { %v631_v42 = vpop.permute.xlu1 %630  ;;  %573 = vst.msk [vmem:[#allocation2 + $0x58] sm:$0xff] %vm561_vm3, %v536_v41 }
 0x139   : > { %669 = vst.msk [vmem:[#allocation2 + $0x50] sm:$0xff] %vm658_vm4, %v631_v42 }
 0x13b   : > { %v921_v43 = vpop.permute.xlu0 %920 }
 0x13c   : > { %v1016_v44 = vpop.permute.xlu1 %1015  ;;  %960 = vst.msk [vmem:[#allocation2 + $0x48] sm:$0xff] %vm950_vm7, %v921_v43 }
 0x13d   : > { %1056 = vst.msk [vmem:[#allocation2 + $0x40] sm:$0xff] %vm1047_vm8, %v1016_v44 }
 0x13e   : > { %1073 = vst.msk [vmem:[#allocation2 + $0x40] sm:$0xff] %vm1064_vm9, %v1954_v63 }
 0x13f   : > { %v343_v45 = vpop.permute.xlu0 %342 }
 0x140   : > { %v633_v46 = vpop.permute.xlu1 %632  ;;  %379 = vst.msk [vmem:[#allocation2 + $0x60] sm:$0xff] %vm366_vm1, %v343_v45 }
 0x141   : > { %670 = vst.msk [vmem:[#allocation2 + $0x58] sm:$0xff] %vm658_vm4, %v633_v46 }
 0x143   : > { %v728_v47 = vpop.permute.xlu0 %727 }
 0x144   : > { %v1018_v48 = vpop.permute.xlu1 %1017  ;;  %766 = vst.msk [vmem:[#allocation2 + $0x50] sm:$0xff] %vm755_vm5, %v728_v47 }
 0x145   : > { %1057 = vst.msk [vmem:[#allocation2 + $0x48] sm:$0xff] %vm1047_vm8, %v1018_v48  ;;  %v1089_v49 = vld [vmem:[#allocation2 + $0x40] sm:$0xff] }
 0x146   : > { %1074 = vst.msk [vmem:[#allocation2 + $0x48] sm:$0xff] %vm1064_vm9, %v1954_v63  ;;  %1687 = vmatprep.mubr.f32.mxu1 %v1089_v49 }
 0x147   : > { %v345_v50 = vpop.permute.xlu0 %344 }
 0x148   : > { %v440_v51 = vpop.permute.xlu1 %439  ;;  %380 = vst.msk [vmem:[#allocation2 + $0x68] sm:$0xff] %vm366_vm1, %v345_v50 }
 0x149   : > { %476 = vst.msk [vmem:[#allocation2 + $0x60] sm:$0xff] %vm463_vm2, %v440_v51 }
 0x14b   : > { %v730_v52 = vpop.permute.xlu0 %729 }
 0x14c   : > { %v826_v53 = vpop.permute.xlu1 %825  ;;  %767 = vst.msk [vmem:[#allocation2 + $0x58] sm:$0xff] %vm755_vm5, %v730_v52 }
 0x14d   : > { %864 = vst.msk [vmem:[#allocation2 + $0x50] sm:$0xff] %vm853_vm6, %v826_v53  ;;  %v1090_v54 = vld [vmem:[#allocation2 + $0x48] sm:$0xff] }
 0x14e   : > { %1688 = vmatmul.mubr.f32.vlgmr.msra.gmra.mxu1 %v1090_v54 }
 0x14f   : > { %v442_v55 = vpop.permute.xlu0 %441 }
 0x150   : > { %v538_v56 = vpop.permute.xlu1 %537  ;;  %477 = vst.msk [vmem:[#allocation2 + $0x68] sm:$0xff] %vm463_vm2, %v442_v55 }
 0x151   : > { %574 = vst.msk [vmem:[#allocation2 + $0x60] sm:$0xff] %vm561_vm3, %v538_v56 }
 0x153   : > { %v828_v57 = vpop.permute.xlu0 %827 }
 0x154   : > { %v923_v58 = vpop.permute.xlu1 %922  ;;  %865 = vst.msk [vmem:[#allocation2 + $0x58] sm:$0xff] %vm853_vm6, %v828_v57 }
 0x155   : > { %961 = vst.msk [vmem:[#allocation2 + $0x50] sm:$0xff] %vm950_vm7, %v923_v58 }
 0x157   : > { %v540_v59 = vpop.permute.xlu0 %539 }
 0x158   : > { %v635_v60 = vpop.permute.xlu1 %634  ;;  %575 = vst.msk [vmem:[#allocation2 + $0x68] sm:$0xff] %vm561_vm3, %v540_v59 }
 0x159   : > { %671 = vst.msk [vmem:[#allocation2 + $0x60] sm:$0xff] %vm658_vm4, %v635_v60 }
 0x15b   : > { %v925_v61 = vpop.permute.xlu0 %924 }
 0x15c   : > { %v1020_v62 = vpop.permute.xlu1 %1019  ;;  %962 = vst.msk [vmem:[#allocation2 + $0x58] sm:$0xff] %vm950_vm7, %v925_v61 }
 0x15d   : > { %1058 = vst.msk [vmem:[#allocation2 + $0x50] sm:$0xff] %vm1047_vm8, %v1020_v62 }
 0x15e   : > { %1075 = vst.msk [vmem:[#allocation2 + $0x50] sm:$0xff] %vm1064_vm9, %v1954_v63 }
 0x15f   : > { %v347_v0 = vpop.permute.xlu0 %346 }
 0x160   : > { %v637_v1 = vpop.permute.xlu1 %636  ;;  %381 = vst.msk [vmem:[#allocation2 + $0x70] sm:$0xff] %vm366_vm1, %v347_v0 }
 0x161   : > { %672 = vst.msk [vmem:[#allocation2 + $0x68] sm:$0xff] %vm658_vm4, %v637_v1 }
 0x163   : > { %v732_v2 = vpop.permute.xlu0 %731 }
 0x164   : > { %v1022_v3 = vpop.permute.xlu1 %1021  ;;  %768 = vst.msk [vmem:[#allocation2 + $0x60] sm:$0xff] %vm755_vm5, %v732_v2 }
 0x165   : > { %1059 = vst.msk [vmem:[#allocation2 + $0x58] sm:$0xff] %vm1047_vm8, %v1022_v3  ;;  %v1091_v4 = vld [vmem:[#allocation2 + $0x50] sm:$0xff] }
 0x166   : > { %1076 = vst.msk [vmem:[#allocation2 + $0x58] sm:$0xff] %vm1064_vm9, %v1954_v63  ;;  %1690 = vmatprep.mubr.f32.mxu1 %v1091_v4 }
 0x167   : > { %v349_v5 = vpop.permute.xlu0 %348 }
 0x168   : > { %v444_v6 = vpop.permute.xlu1 %443  ;;  %382 = vst.msk [vmem:[#allocation2 + $0x78] sm:$0xff] %vm366_vm1, %v349_v5 }
 0x169   : > { %478 = vst.msk [vmem:[#allocation2 + $0x70] sm:$0xff] %vm463_vm2, %v444_v6 }
 0x16b   : > { %v734_v7 = vpop.permute.xlu0 %733 }
 0x16c   : > { %v830_v8 = vpop.permute.xlu1 %829  ;;  %769 = vst.msk [vmem:[#allocation2 + $0x68] sm:$0xff] %vm755_vm5, %v734_v7 }
 0x16d   : > { %866 = vst.msk [vmem:[#allocation2 + $0x60] sm:$0xff] %vm853_vm6, %v830_v8  ;;  %v1092_v9 = vld [vmem:[#allocation2 + $0x58] sm:$0xff] }
 0x16e   : > { %1691 = vmatmul.mubr.f32.gmra.mxu1 %v1092_v9 }
 0x16f   : > { %v446_v10 = vpop.permute.xlu0 %445 }
 0x170   : > { %v542_v11 = vpop.permute.xlu1 %541  ;;  %479 = vst.msk [vmem:[#allocation2 + $0x78] sm:$0xff] %vm463_vm2, %v446_v10 }
 0x171   : > { %576 = vst.msk [vmem:[#allocation2 + $0x70] sm:$0xff] %vm561_vm3, %v542_v11 }
 0x173   : > { %v832_v12 = vpop.permute.xlu0 %831 }
 0x174   : > { %v927_v13 = vpop.permute.xlu1 %926  ;;  %867 = vst.msk [vmem:[#allocation2 + $0x68] sm:$0xff] %vm853_vm6, %v832_v12 }
 0x175   : > { %963 = vst.msk [vmem:[#allocation2 + $0x60] sm:$0xff] %vm950_vm7, %v927_v13 }
 0x177   : > { %v544_v14 = vpop.permute.xlu0 %543 }
 0x178   : > { %v639_v15 = vpop.permute.xlu1 %638  ;;  %577 = vst.msk [vmem:[#allocation2 + $0x78] sm:$0xff] %vm561_vm3, %v544_v14 }
 0x179   : > { %673 = vst.msk [vmem:[#allocation2 + $0x70] sm:$0xff] %vm658_vm4, %v639_v15 }
 0x17b   : > { %v929_v16 = vpop.permute.xlu0 %928 }
 0x17c   : > { %v1024_v17 = vpop.permute.xlu1 %1023  ;;  %964 = vst.msk [vmem:[#allocation2 + $0x68] sm:$0xff] %vm950_vm7, %v929_v16 }
 0x17d   : > { %1060 = vst.msk [vmem:[#allocation2 + $0x60] sm:$0xff] %vm1047_vm8, %v1024_v17 }
 0x17e   : > { %1077 = vst.msk [vmem:[#allocation2 + $0x60] sm:$0xff] %vm1064_vm9, %v1954_v63 }
 0x17f   : > { %v641_v18 = vpop.permute.xlu0 %640 }
 0x180   : > { %v736_v19 = vpop.permute.xlu1 %735  ;;  %674 = vst.msk [vmem:[#allocation2 + $0x78] sm:$0xff] %vm658_vm4, %v641_v18 }
 0x181   : > { %770 = vst.msk [vmem:[#allocation2 + $0x70] sm:$0xff] %vm755_vm5, %v736_v19 }
 0x183   : > { %v1026_v20 = vpop.permute.xlu0 %1025 }
 0x184   : > { %v738_v21 = vpop.permute.xlu1 %737  ;;  %1061 = vst.msk [vmem:[#allocation2 + $0x68] sm:$0xff] %vm1047_vm8, %v1026_v20 }
 0x185   : > { %771 = vst.msk [vmem:[#allocation2 + $0x78] sm:$0xff] %vm755_vm5, %v738_v21  ;;  %v1093_v22 = vld [vmem:[#allocation2 + $0x60] sm:$0xff] }
 0x186   : > { %1078 = vst.msk [vmem:[#allocation2 + $0x68] sm:$0xff] %vm1064_vm9, %v1954_v63  ;;  %1693 = vmatprep.mubr.f32.mxu1 %v1093_v22 }
 0x187   : > { %v834_v23 = vpop.permute.xlu0 %833 }
 0x188   : > { %v836_v24 = vpop.permute.xlu1 %835  ;;  %868 = vst.msk [vmem:[#allocation2 + $0x70] sm:$0xff] %vm853_vm6, %v834_v23 }
 0x189   : > { %869 = vst.msk [vmem:[#allocation2 + $0x78] sm:$0xff] %vm853_vm6, %v836_v24 }
 0x18b   : > { %v931_v25 = vpop.permute.xlu0 %930 }
 0x18c   : > { %v933_v26 = vpop.permute.xlu1 %932  ;;  %965 = vst.msk [vmem:[#allocation2 + $0x70] sm:$0xff] %vm950_vm7, %v931_v25 }
 0x18d   : > { %966 = vst.msk [vmem:[#allocation2 + $0x78] sm:$0xff] %vm950_vm7, %v933_v26  ;;  %v1094_v27 = vld [vmem:[#allocation2 + $0x68] sm:$0xff] }
 0x18e   : > { %1694 = vmatmul.mubr.f32.gmra.mxu1 %v1094_v27 }
 0x18f   : > { %v1028_v28 = vpop.permute.xlu0 %1027 }
 0x190   : > { %v1030_v30 = vpop.permute.xlu1 %1029  ;;  %1062 = vst.msk [vmem:[#allocation2 + $0x70] sm:$0xff] %vm1047_vm8, %v1028_v28 }
 0x191   : > { %1063 = vst.msk [vmem:[#allocation2 + $0x78] sm:$0xff] %vm1047_vm8, %v1030_v30 }
 0x192   : > { %1079 = vst.msk [vmem:[#allocation2 + $0x70] sm:$0xff] %vm1064_vm9, %v1954_v63  ;;  %1080 = vst.msk [vmem:[#allocation2 + $0x78] sm:$0xff] %vm1064_vm9, %v1954_v63 }
 0x199   : > { %v1095_v31 = vld [vmem:[#allocation2 + $0x70] sm:$0xff]  ;;  %v1096_v32 = vld [vmem:[#allocation2 + $0x78] sm:$0xff] }
 0x19a   : > { %1696 = vmatprep.mubr.f32.mxu1 %v1095_v31 }
 0x19b   : > { %1697 = vmatmul.mubr.f32.gmra.mxu1 %v1096_v32 }
 0x1be   : > { %v1677_v33 = vpop.f32.mrf.mxu0 }
 0x1bf   : > { %v1192_v29 = vadd.f32 %v1677_v33, %v1589_v35 }
 0x1c0   : > { %v1186_v34 = vpop.f32.mrf.mxu0 }
 0x1c1   : > { %v1187_v37 = vadd.f32 %v1589_v35, %v1186_v34  ;;  %v1266_v39 = vmax.f32 %v1192_v29, 0.0 }
 0x1c2   : > { %v1680_v36 = vpop.f32.mrf.mxu0 }
 0x1c3   : > { %v1265_v40 = vmax.f32 %v1187_v37, 0.0  ;;  %v1202_v63 = vadd.f32 %v1680_v36, %v1589_v35 }
 0x1c4   : > { %v1196_v38 = vpop.f32.mrf.mxu0 }
 0x1c5   : > { %v1197_v41 = vadd.f32 %v1589_v35, %v1196_v38  ;;  %v1282_v43 = vadd.f32 %v1266_v39, %v1265_v40  ;;  %v1268_v46 = vmax.f32 %v1202_v63, 0.0  ;;  %v1281_v38 = vld [vmem:[#allocation3] sm:$0x1] }
 0x1c7   : > { %v1267_v44 = vmax.f32 %v1197_v41, 0.0 }
 0x1c9   : > { %v1283_v47 = vadd.f32 %v1282_v43, %v1267_v44 }
 0x1cb   : > { %v1284_v52 = vadd.f32 %v1283_v47, %v1268_v46 }
 0x1ce   : > { %v1683_v42 = vpop.f32.mrf.mxu0 }
 0x1cf   : > { %v1212_v50 = vadd.f32 %v1683_v42, %v1589_v35 }
 0x1d0   : > { %v1206_v45 = vpop.f32.mrf.mxu0 }
 0x1d1   : > { %v1207_v48 = vadd.f32 %v1589_v35, %v1206_v45  ;;  %v1270_v54 = vmax.f32 %v1212_v50, 0.0 }
 0x1d3   : > { %v1269_v51 = vmax.f32 %v1207_v48, 0.0 }
 0x1d5   : > { %v1285_v55 = vadd.f32 %v1284_v52, %v1269_v51 }
 0x1d7   : > { %v1286_v60 = vadd.f32 %v1285_v55, %v1270_v54 }
 0x1ee   : > { %v1686_v49 = vpop.f32.mrf.mxu0 }
 0x1ef   : > { %v1222_v58 = vadd.f32 %v1686_v49, %v1589_v35 }
 0x1f0   : > { %v1216_v53 = vpop.f32.mrf.mxu0 }
 0x1f1   : > { %v1217_v56 = vadd.f32 %v1589_v35, %v1216_v53  ;;  %v1272_v62 = vmax.f32 %v1222_v58, 0.0 }
 0x1f3   : > { %v1271_v59 = vmax.f32 %v1217_v56, 0.0 }
 0x1f5   : > { %v1287_v0 = vadd.f32 %v1286_v60, %v1271_v59 }
 0x1f7   : > { %v1288_v5 = vadd.f32 %v1287_v0, %v1272_v62 }
 0x20e   : > { %v1689_v57 = vpop.f32.mrf.mxu1 }
 0x20f   : > { %v1232_v3 = vadd.f32 %v1689_v57, %v1589_v35 }
 0x210   : > { %v1226_v61 = vpop.f32.mrf.mxu1 }
 0x211   : > { %v1227_v1 = vadd.f32 %v1589_v35, %v1226_v61  ;;  %v1274_v7 = vmax.f32 %v1232_v3, 0.0 }
 0x213   : > { %v1273_v4 = vmax.f32 %v1227_v1, 0.0 }
 0x215   : > { %v1289_v8 = vadd.f32 %v1288_v5, %v1273_v4 }
 0x217   : > { %v1290_v13 = vadd.f32 %v1289_v8, %v1274_v7 }
 0x22e   : > { %v1692_v2 = vpop.f32.mrf.mxu1 }
 0x22f   : > { %v1242_v11 = vadd.f32 %v1692_v2, %v1589_v35 }
 0x230   : > { %v1236_v6 = vpop.f32.mrf.mxu1 }
 0x231   : > { %v1237_v9 = vadd.f32 %v1589_v35, %v1236_v6  ;;  %v1276_v15 = vmax.f32 %v1242_v11, 0.0 }
 0x233   : > { %v1275_v12 = vmax.f32 %v1237_v9, 0.0 }
 0x235   : > { %v1291_v16 = vadd.f32 %v1290_v13, %v1275_v12 }
 0x237   : > { %v1292_v20 = vadd.f32 %v1291_v16, %v1276_v15 }
 0x24e   : > { %v1695_v10 = vpop.f32.mrf.mxu1 }
 0x24f   : > { %v1252_v18 = vadd.f32 %v1695_v10, %v1589_v35 }
 0x250   : > { %v1246_v14 = vpop.f32.mrf.mxu1 }
 0x251   : > { %v1247_v17 = vadd.f32 %v1589_v35, %v1246_v14  ;;  %v1278_v22 = vmax.f32 %v1252_v18, 0.0 }
 0x253   : > { %v1277_v19 = vmax.f32 %v1247_v17, 0.0 }
 0x255   : > { %v1293_v23 = vadd.f32 %v1292_v20, %v1277_v19 }
 0x257   : > { %v1294_v28 = vadd.f32 %v1293_v23, %v1278_v22 }
 0x25b   : > { %v1698_v21 = vpop.f32.mrf.mxu1 }
 0x25c   : > { %v1262_v25 = vadd.f32 %v1698_v21, %v1589_v35 }
 0x25d   : > { %v1256_v24 = vpop.f32.mrf.mxu1 }
 0x25e   : > { %v1257_v26 = vadd.f32 %v1589_v35, %v1256_v24  ;;  %v1280_v30 = vmax.f32 %v1262_v25, 0.0 }
 0x260   : > { %v1279_v27 = vmax.f32 %v1257_v26, 0.0 }
 0x262   : > { %v1295_v31 = vadd.f32 %v1294_v28, %v1279_v27 }
 0x264   : > { %v1296_v32 = vadd.f32 %v1295_v31, %v1280_v30 }
 0x266   : > { %v1297_v33 = vrot.slane %v1296_v32, 4 }
 0x268   : > { %v1298_v34 = vadd.f32 %v1297_v33, %v1296_v32 }
 0x26a   : > { %v1299_v36 = vrot.slane %v1298_v34, 2 }
 0x26c   : > { %v1300_v29 = vadd.f32 %v1299_v36, %v1298_v34 }
 0x26e   : > { %v1301_v37 = vrot.slane %v1300_v29, 1 }
 0x270   : > { %v1302_v39 = vadd.f32 %v1301_v37, %v1300_v29  ;;  %1308 = sbr.rel (%p1590_p1) target bundleno = 858 (0x35a), region = 48 }
 0x272   : > { %v1303_v40 = vadd.f32 %v1302_v39, %v1281_v38 }
 0x274   : > { %1304 = vst [vmem:[#allocation3] sm:$0x1] %v1303_v40 }
 0x275   : > { %v1325_v35 = vld [vmem:[%s2635_s3 + $0x78] sm:$0xff]  ;;  %v1955_v41 = vmov 0.0   ;;  %v1324_v42 = vld [vmem:[%s2635_s3 + $0x70] sm:$0xff]  ;;  %vm1956_vm10 = vmmov 0   ;;  %v1323_v43 = vld [vmem:[%s2635_s3 + $0x68] sm:$0xff] }
 0x276   : > { %1699 = vmatprep.subr.mxu0 %v1955_v41  ;;  %1731 = vmatprep.mubr.msk.f32.mxu0 %vm1956_vm10, %v1955_v41  ;;  %v1322_v63 = vld [vmem:[%s2635_s3 + $0x60] sm:$0xff]  ;;  %v1321_v44 = vld [vmem:[%s2635_s3 + $0x58] sm:$0xff]  ;;  %v1320_v45 = vld [vmem:[%s2635_s3 + $0x50] sm:$0xff] }
 0x277   : > { %1700 = vmatpush3.msra.mxu0 %v1325_v35  ;;  %v1319_v46 = vld [vmem:[%s2635_s3 + $0x48] sm:$0xff]  ;;  %v1318_v47 = vld [vmem:[%s2635_s3 + $0x40] sm:$0xff]  ;;  %v1317_v48 = vld [vmem:[%s2635_s3 + $0x38] sm:$0xff] }
 0x278   : > { %1701 = vmatprep.subr.mxu0 %v1955_v41  ;;  %v1316_v49 = vld [vmem:[%s2635_s3 + $0x30] sm:$0xff]  ;;  %v1315_v50 = vld [vmem:[%s2635_s3 + $0x28] sm:$0xff]  ;;  %v1314_v51 = vld [vmem:[%s2635_s3 + $0x20] sm:$0xff] }
 0x279   : > { %1702 = vmatpush3.msra.mxu0 %v1324_v42  ;;  %v1313_v52 = vld [vmem:[%s2635_s3 + $0x18] sm:$0xff]  ;;  %v1312_v53 = vld [vmem:[%s2635_s3 + $0x10] sm:$0xff]  ;;  %v1311_v54 = vld [vmem:[%s2635_s3 + $0x8] sm:$0xff] }
 0x27a   : > { %1703 = vmatprep.subr.mxu0 %v1955_v41  ;;  %v1310_v55 = vld [vmem:[%s2635_s3] sm:$0xff] }
 0x27b   : > { %1704 = vmatpush3.msra.mxu0 %v1323_v43  ;;  %v1309_v56 = vld [vmem:[#allocation3] sm:$0x1] }
 0x27c   : > { %1705 = vmatprep.subr.mxu0 %v1955_v41  ;;  %v1326_v57 = vld [vmem:[%s2636_s4] sm:$0x1] }
 0x27d   : > { %1706 = vmatpush3.msra.mxu0 %v1322_v63 }
 0x27e   : > { %1707 = vmatprep.subr.mxu0 %v1955_v41 }
 0x27f   : > { %1708 = vmatpush3.msra.mxu0 %v1321_v44 }
 0x280   : > { %1709 = vmatprep.subr.mxu0 %v1955_v41 }
 0x281   : > { %1710 = vmatpush3.msra.mxu0 %v1320_v45 }
 0x282   : > { %1711 = vmatprep.subr.mxu0 %v1955_v41 }
 0x283   : > { %1712 = vmatpush3.msra.mxu0 %v1319_v46 }
 0x284   : > { %1713 = vmatprep.subr.mxu0 %v1955_v41 }
 0x285   : > { %1714 = vmatpush3.msra.mxu0 %v1318_v47 }
 0x286   : > { %1715 = vmatprep.subr.mxu0 %v1955_v41 }
 0x287   : > { %1716 = vmatpush3.msra.mxu0 %v1317_v48 }
 0x288   : > { %1717 = vmatprep.subr.mxu0 %v1955_v41 }
 0x289   : > { %1718 = vmatpush3.msra.mxu0 %v1316_v49 }
 0x28a   : > { %1719 = vmatprep.subr.mxu0 %v1955_v41 }
 0x28b   : > { %1720 = vmatpush3.msra.mxu0 %v1315_v50 }
 0x28c   : > { %1721 = vmatprep.subr.mxu0 %v1955_v41 }
 0x28d   : > { %1722 = vmatpush3.msra.mxu0 %v1314_v51 }
 0x28e   : > { %1723 = vmatprep.subr.mxu0 %v1955_v41 }
 0x28f   : > { %1724 = vmatpush3.msra.mxu0 %v1313_v52 }
 0x290   : > { %1725 = vmatprep.subr.mxu0 %v1955_v41 }
 0x291   : > { %1726 = vmatpush3.msra.mxu0 %v1312_v53 }
 0x292   : > { %1727 = vmatprep.subr.mxu0 %v1955_v41 }
 0x293   : > { %1728 = vmatpush3.msra.mxu0 %v1311_v54 }
 0x294   : > { %1729 = vmatprep.subr.mxu0 %v1955_v41 }
 0x295   : > { %1730 = vmatpush3.msra.mxu0 %v1310_v55 }
 0x296   : > { %1732 = vmatmul.mubr.f32.vlgmr.msra.gmra.mxu0 %v1309_v56 }
 0x356   : > { %v1393_v58 = vpop.f32.mrf.mxu0 }
 0x357   : > { %v1394_v59 = vadd.f32 %v1393_v58, %v1326_v57 }
 0x358   : > { %v1733_v60 = vpop.f32.mrf.mxu0 }
 0x359   : > { %1397 = vst [vmem:[%s2069_s7] sm:$0x1] %v1394_v59 }
 0x35a PF: > { %s1591_s27 = sshll.u32 %s1931_s22, 4  ;;  %s1411_s8 = sshll.u32 %s2069_s7, 4  ;;  %s1412_s8 = int_to_ptr.vmem [resolvable:$true] %s1411_s8 }
 0x35b   : > { %s1409_s15 = scalar_lea.hbm %s2637_s5, %s1591_s27  ;;  %s2653_s17 = sand.u32 1, %s1919_s19  }
 0x35c   : > { %s1399_s10 = scalar_lea.sflag [#allocation5], %s2653_s17  ;;  %s1851_s26 = scalar_lea.vmem %s1412_s8, 16 }
 0x35d   : > { %p1852_p2 = scmp.ne.s32.totalorder %s1412_s8, %s1851_s26  ;;  %s1957_s21 = smov [#allocation4]  }
 0x35e   : > { %s1855_s16 = sshll.u32 %s1957_s21, 4  ;;  %s1856_s16 = int_to_ptr.vmem [resolvable:$false] %s1855_s16 }
 0x35f   : > { %p1853_p4 = pnand %p1852_p2, %p2037_p3  ;;  %s1857_s12 = scalar_lea.vmem %s1856_s16, 32 }
 0x360   : > { %p1858_p6 = scmp.lt.s32.totalorder %s1412_s8, %s1856_s16  ;;  %p1859_p7 = scmp.lt.s32.totalorder %s1857_s12, %s1851_s26 }
 0x361   : > { %p1854_p5 = pneg %p1853_p4 }
 0x362   : > { %p1860_p8 = por %p1859_p7, %p1858_p6 }
 0x364   : > { %p1861_p10 = pnand %p1860_p8, %p1854_p5 }
 0x366   : > { %1864 = shalt.err (!%p1861_p10)
}
 0x367   : > { %s1865_s22 = scalar_lea.hbm %s1409_s15, 16  ;;  %s1869_s27 = scalar_lea.hbm %s2637_s5, 32 }
 0x368   : > { %p1866_p11 = scmp.ne.s32.totalorder %s1409_s15, %s1865_s22  ;;  %p1870_p0 = scmp.lt.s32.totalorder %s1409_s15, %s2637_s5 }
 0x369   : > { %p1871_p1 = scmp.lt.s32.totalorder %s1869_s27, %s1865_s22 }
 0x36a   : > { %p1867_p12 = pnand %p1866_p11, %p2037_p3 }
 0x36b   : > { %p1872_p2 = por %p1871_p1, %p1870_p0 }
 0x36c   : > { %p1868_p13 = pneg %p1867_p12 }
 0x36e   : > { %p1873_p4 = pnand %p1872_p2, %p1868_p13 }
 0x370   : > { %1876 = shalt.err (!%p1873_p4)
}
 0x371   : > { %1768 = dma.vmem_to_hbm [thread:$0]  (%p2037_p3), %s1412_s8, 16, %s1409_s15, %s1399_s10  }
 0x372 PF: > { %p1774_p5 = scmp.ge.s32.totalorder %s1943_s25, 2  ;;  %s1423_s17 = sand.u32 1, %s1915_s18  }
 0x373   : > { %s1424_s26 = scalar_lea.sflag [#allocation5], %s1423_s17 }
 0x374   : > { %p1771_p6 = pnand %p1774_p5, %p2047_p9 }
 0x376   : > { %p1772_p7 = pneg %p1771_p6 }
 0x378   : > { %1910 = dma.done.wait (%p1772_p7), %s1424_s26, 16  }
 0x379   : > { %1912 = vsyncadd (%p1772_p7), %s1424_s26, 4294967280  ;;  %s18_s25 = sadd.s32 1, %s1943_s25   ;;  %s2654_s18 = smov %s1919_s19 }
 0x37a   : > { %p15_p8 = scmp.ge.s32.totalorder %s18_s25, 6   ;;  %s2655_s19 = smov %s1923_s20 }
 0x37b   : > { %s2656_s20 = smov %s2055_s9  ;;  %s2657_s21 = smov %s1935_s23 }
 0x37c   : > { %s2658_s22 = smov %s1939_s24  ;;  %s2659_s23 = smov %s2662_s28 }
 0x37d   : > { %s2660_s24 = smov %s2666_s29  ;;  %17 = sbr.rel (!%p15_p8) target bundleno = 5 (0x5), region = 85 }
 0x382   :  { %1428 = vsyncpa [#allocation5], 1 }
 0x383   :  { %1430 = vsyncpa [#allocation5 + $0x1], 1 }

</bundles_post_ra>
